<compile_context>
chip_gen: v7x
topology: tpu7x:2x2x1
jax: 0.10.0
libtpu: 0.0.40
codegen_flags: <defaults>
</compile_context>

<pallas_src>
import functools

import jax
import jax.numpy as jnp
from jax.experimental import pallas as pl
from jax.experimental.pallas import tpu as pltpu

BN_EPS = 1e-5
LANE = 128  # TPU vreg lane width


def _round_up(x, m):
    return (x + m - 1) // m * m


def _feature_transformer_kernel(x_ref, w0_ref, wr_ref, b_ref, o_ref, *,
                                n_layers, hp):
    """All GLU layers fused; BN already folded into (w0, wr, bias) on the host.

    x_ref : [TB, K0]        f32   raw input features for this batch tile
    w0_ref: [K0, 2*Hp]      bf16  folded layer-0 weight, value|gate packed
    wr_ref: [L-1, Hp, 2*Hp] bf16  folded weights for layers 1..L-1
    b_ref : [L, 1, 2*Hp]    f32   folded bias per layer, value|gate packed
    o_ref : [TB, Hp]        bf16  lane-dense output (real cols sliced on host)
    """
    h = x_ref[...].astype(jnp.bfloat16)  # bf16 cast fused into the kernel
    for l in range(n_layers):
        w = w0_ref[...] if l == 0 else wr_ref[l - 1]      # static layer index
        # One MXU matmul per layer (bf16 in, f32 accumulate), N = 2*Hp.
        y = jnp.dot(h, w, preferred_element_type=jnp.float32) + b_ref[l]
        # GLU: lane-aligned static split (Hp is a multiple of 128).
        out = y[:, :hp] * jax.nn.sigmoid(y[:, hp:])
        if l + 1 < n_layers:
            h = out.astype(jnp.bfloat16)                  # stays VMEM-resident
        else:
            o_ref[...] = out.astype(o_ref.dtype)


def fold_bn_and_pack(params, input_dim, hidden_dim):
    """Fold eval-mode BatchNorm into the Linear weights; pack GLU halves.

    Value half lives in columns [0, Hp), gate half in [Hp, 2*Hp), each
    zero-padded from hidden_dim to Hp so the in-kernel split is lane-aligned.
    Layer-0 keeps its true K (= input_dim); later layers use K = Hp.
    """
    n_layers = len(params)
    hp = _round_up(hidden_dim, LANE)
    n_rest = max(n_layers - 1, 1)

    w0 = jnp.zeros((input_dim, 2 * hp), jnp.float32)
    wr = jnp.zeros((n_rest, hp, 2 * hp), jnp.float32)
    bias = jnp.zeros((n_layers, 1, 2 * hp), jnp.float32)

    for l, p in enumerate(params):
        scale = p["gamma"][0] * jax.lax.rsqrt(p["var"][0] + BN_EPS)      # [2H]
        w_f = p["w"] * scale[None, :]                                    # [din, 2H]
        b_f = (p["b"][0] - p["mean"][0]) * scale + p["beta"][0]          # [2H]
        if l == 0:
            w0 = w0.at[:, :hidden_dim].set(w_f[:, :hidden_dim])
            w0 = w0.at[:, hp:hp + hidden_dim].set(w_f[:, hidden_dim:])
        else:
            wr = wr.at[l - 1, :hidden_dim, :hidden_dim].set(w_f[:, :hidden_dim])
            wr = wr.at[l - 1, :hidden_dim, hp:hp + hidden_dim].set(
                w_f[:, hidden_dim:])
        bias = bias.at[l, 0, :hidden_dim].set(b_f[:hidden_dim])
        bias = bias.at[l, 0, hp:hp + hidden_dim].set(b_f[hidden_dim:])

    return w0.astype(jnp.bfloat16), wr.astype(jnp.bfloat16), bias, hp


def feature_transformer_forward(x, params, input_dim, hidden_dim, *, tb=512):
    """FeatureTransformer.forward (eval): one fused pallas_call over all GLU blocks."""
    B = x.shape[0]
    n_layers = len(params)
    w0, wr, bias, hp = fold_bn_and_pack(params, input_dim, hidden_dim)
    n_rest = wr.shape[0]

    # Batch tile: multiple of 8, at most tb; pad batch only if it does not
    # divide the tile (single cheap row-pad, no K padding, no host-side cast).
    tb_eff = min(tb, _round_up(B, 8))
    bp = _round_up(B, tb_eff)
    if bp != B:
        xk = jnp.zeros((bp, input_dim), x.dtype).at[:B].set(x)
    else:
        xk = x

    kernel = functools.partial(_feature_transformer_kernel,
                               n_layers=n_layers, hp=hp)
    out = pl.pallas_call(
        kernel,
        out_shape=jax.ShapeDtypeStruct((bp, hp), jnp.bfloat16),
        grid=(bp // tb_eff,),
        in_specs=[
            pl.BlockSpec((tb_eff, input_dim), lambda i: (i, 0)),      # batch-tiled input
            pl.BlockSpec((input_dim, 2 * hp), lambda i: (0, 0)),      # layer-0 weight
            pl.BlockSpec((n_rest, hp, 2 * hp), lambda i: (0, 0, 0)),  # layers 1..L-1
            pl.BlockSpec((n_layers, 1, 2 * hp), lambda i: (0, 0, 0)), # packed biases
        ],
        out_specs=pl.BlockSpec((tb_eff, hp), lambda i: (i, 0)),
        compiler_params=pltpu.CompilerParams(
            dimension_semantics=("parallel",),
            vmem_limit_bytes=48 * 1024 * 1024),
    )(xk, w0, wr, bias)
    return out[:B, :hidden_dim]


def init_feature_transformer_params(key, input_dim, hidden_dim, n_glu_layers):
    """Deterministic parameter init matching FeatureTransformer.__init__ shapes."""
    params = []
    for i in range(n_glu_layers):
        din = input_dim if i == 0 else hidden_dim
        key, kw, kb, kg, kbt, km, kv = jax.random.split(key, 7)
        two_h = 2 * hidden_dim
        bound = 1.0 / jnp.sqrt(din)
        w = jax.random.uniform(kw, (din, two_h), jnp.float32, -bound, bound)
        b = jax.random.uniform(kb, (1, two_h), jnp.float32, -bound, bound)
        gamma = 1.0 + 0.1 * jax.random.normal(kg, (1, two_h), jnp.float32)
        beta = 0.1 * jax.random.normal(kbt, (1, two_h), jnp.float32)
        mean = 0.1 * jax.random.normal(km, (1, two_h), jnp.float32)
        var = jnp.abs(1.0 + 0.1 * jax.random.normal(kv, (1, two_h), jnp.float32))
        params.append(dict(w=w, b=b, gamma=gamma, beta=beta, mean=mean, var=var))
    return params


def _reference_forward(x, params, hidden_dim):
    """Pure-JAX f32 reference (unfused Linear + eval BN + GLU) for sanity checking."""
    for p in params:
        y = x @ p["w"] + p["b"]
        y = (y - p["mean"]) / jnp.sqrt(p["var"] + BN_EPS) * p["gamma"] + p["beta"]
        a, g = y[:, :hidden_dim], y[:, hidden_dim:]
        x = a * jax.nn.sigmoid(g)
    return x


if __name__ == "__main__":
    key = jax.random.PRNGKey(0)
    batch, input_dim, hidden_dim, n_glu_layers = 200, 16, 32, 3

    kx, kp = jax.random.split(key)
    x = jax.random.normal(kx, (batch, input_dim), jnp.float32)
    params = init_feature_transformer_params(kp, input_dim, hidden_dim, n_glu_layers)

    out = feature_transformer_forward(x, params, input_dim, hidden_dim, tb=512)
    out = jax.block_until_ready(out)

    ref = _reference_forward(x, params, hidden_dim)
    assert out.shape == (batch, hidden_dim)
    # bf16 weights/activations/output vs f32 reference -> relaxed tolerance.
    err = jnp.max(jnp.abs(out.astype(jnp.float32) - ref))
    assert jnp.allclose(out.astype(jnp.float32), ref, atol=5e-2, rtol=5e-2), float(err)

    print("KERNEL_OK")
</pallas_src>

<mosaic_0001>
module attributes {stable_mosaic.version = 11 : i64} {
  func.func @_feature_transformer_kernel(%arg0: i32, %arg1: memref<200x16xf32, #tpu.memory_space<vmem>>, %arg2: memref<16x256xbf16, #tpu.memory_space<vmem>>, %arg3: memref<2x128x256xbf16, #tpu.memory_space<vmem>>, %arg4: memref<3x1x256xf32, #tpu.memory_space<vmem>>, %arg5: memref<200x128xbf16, #tpu.memory_space<vmem>>) attributes {dimension_semantics = [#tpu.dimension_semantics<parallel>], iteration_bounds = array<i64: 1>, scalar_prefetch = 0 : i64, scratch_operands = 0 : i64, tpu.core_type = #tpu.core_type<tc>, window_params = [{transform_indices = @transform_0, window_bounds = array<i64: 200, 16>}, {pipeline_mode = #tpu.pipeline_mode<synchronous>, transform_indices = @transform_1, window_bounds = array<i64: 16, 256>}, {pipeline_mode = #tpu.pipeline_mode<synchronous>, transform_indices = @transform_2, window_bounds = array<i64: 2, 128, 256>}, {pipeline_mode = #tpu.pipeline_mode<synchronous>, transform_indices = @transform_3, window_bounds = array<i64: 3, 1, 256>}, {transform_indices = @transform_4, window_bounds = array<i64: 200, 128>}]} {
    %c0 = arith.constant 0 : index
    %c0_0 = arith.constant 0 : index
    %0 = vector.load %arg1[%c0, %c0_0] : memref<200x16xf32, #tpu.memory_space<vmem>>, vector<200x16xf32>
    %1 = arith.truncf %0 : vector<200x16xf32> to vector<200x16xbf16>
    %c0_1 = arith.constant 0 : index
    %c0_2 = arith.constant 0 : index
    %2 = vector.load %arg2[%c0_1, %c0_2] : memref<16x256xbf16, #tpu.memory_space<vmem>>, vector<16x256xbf16>
    %cst = arith.constant dense<0.000000e+00> : vector<200x256xf32>
    %3 = tpu.matmul %1, %2, %cst {dimension_numbers = #tpu.dot_dimension_numbers<[1], [0], [0], [1], [0, 0, 1, 1], [], []>} : vector<200x16xbf16>, vector<16x256xbf16>, vector<200x256xf32> -> vector<200x256xf32>
    %c0_3 = arith.constant 0 : index
    %c0_4 = arith.constant 0 : index
    %c0_5 = arith.constant 0 : index
    %4 = vector.load %arg4[%c0_3, %c0_4, %c0_5] : memref<3x1x256xf32, #tpu.memory_space<vmem>>, vector<1x1x256xf32>
    %5 = vector.shape_cast %4 : vector<1x1x256xf32> to vector<1x256xf32>
    %6 = vector.broadcast %5 : vector<1x256xf32> to vector<200x256xf32>
    %7 = arith.addf %3, %6 : vector<200x256xf32>
    %8 = vector.extract_strided_slice %7 {offsets = [0, 0], sizes = [200, 128], strides = [1, 1]} : vector<200x256xf32> to vector<200x128xf32>
    %9 = vector.extract_strided_slice %7 {offsets = [0, 128], sizes = [200, 128], strides = [1, 1]} : vector<200x256xf32> to vector<200x128xf32>
    %10 = arith.negf %9 : vector<200x128xf32>
    %11 = math.exp %10 : vector<200x128xf32>
    %cst_6 = arith.constant 1.000000e+00 : f32
    %12 = vector.broadcast %cst_6 : f32 to vector<200x128xf32>
    %13 = arith.addf %12, %11 : vector<200x128xf32>
    %14 = arith.divf %12, %13 : vector<200x128xf32>
    %15 = arith.mulf %8, %14 : vector<200x128xf32>
    %16 = arith.truncf %15 : vector<200x128xf32> to vector<200x128xbf16>
    %c0_7 = arith.constant 0 : index
    %c0_8 = arith.constant 0 : index
    %c0_9 = arith.constant 0 : index
    %17 = vector.load %arg3[%c0_7, %c0_8, %c0_9] : memref<2x128x256xbf16, #tpu.memory_space<vmem>>, vector<1x128x256xbf16>
    %18 = vector.shape_cast %17 : vector<1x128x256xbf16> to vector<128x256xbf16>
    %cst_10 = arith.constant dense<0.000000e+00> : vector<200x256xf32>
    %19 = tpu.matmul %16, %18, %cst_10 {dimension_numbers = #tpu.dot_dimension_numbers<[1], [0], [0], [1], [0, 0, 1, 1], [], []>} : vector<200x128xbf16>, vector<128x256xbf16>, vector<200x256xf32> -> vector<200x256xf32>
    %c1 = arith.constant 1 : index
    %c0_11 = arith.constant 0 : index
    %c0_12 = arith.constant 0 : index
    %20 = vector.load %arg4[%c1, %c0_11, %c0_12] : memref<3x1x256xf32, #tpu.memory_space<vmem>>, vector<1x1x256xf32>
    %21 = vector.shape_cast %20 : vector<1x1x256xf32> to vector<1x256xf32>
    %22 = vector.broadcast %21 : vector<1x256xf32> to vector<200x256xf32>
    %23 = arith.addf %19, %22 : vector<200x256xf32>
    %24 = vector.extract_strided_slice %23 {offsets = [0, 0], sizes = [200, 128], strides = [1, 1]} : vector<200x256xf32> to vector<200x128xf32>
    %25 = vector.extract_strided_slice %23 {offsets = [0, 128], sizes = [200, 128], strides = [1, 1]} : vector<200x256xf32> to vector<200x128xf32>
    %26 = arith.negf %25 : vector<200x128xf32>
    %27 = math.exp %26 : vector<200x128xf32>
    %cst_13 = arith.constant 1.000000e+00 : f32
    %28 = vector.broadcast %cst_13 : f32 to vector<200x128xf32>
    %29 = arith.addf %28, %27 : vector<200x128xf32>
    %30 = arith.divf %28, %29 : vector<200x128xf32>
    %31 = arith.mulf %24, %30 : vector<200x128xf32>
    %32 = arith.truncf %31 : vector<200x128xf32> to vector<200x128xbf16>
    %c1_14 = arith.constant 1 : index
    %c0_15 = arith.constant 0 : index
    %c0_16 = arith.constant 0 : index
    %33 = vector.load %arg3[%c1_14, %c0_15, %c0_16] : memref<2x128x256xbf16, #tpu.memory_space<vmem>>, vector<1x128x256xbf16>
    %34 = vector.shape_cast %33 : vector<1x128x256xbf16> to vector<128x256xbf16>
    %cst_17 = arith.constant dense<0.000000e+00> : vector<200x256xf32>
    %35 = tpu.matmul %32, %34, %cst_17 {dimension_numbers = #tpu.dot_dimension_numbers<[1], [0], [0], [1], [0, 0, 1, 1], [], []>} : vector<200x128xbf16>, vector<128x256xbf16>, vector<200x256xf32> -> vector<200x256xf32>
    %c2 = arith.constant 2 : index
    %c0_18 = arith.constant 0 : index
    %c0_19 = arith.constant 0 : index
    %36 = vector.load %arg4[%c2, %c0_18, %c0_19] : memref<3x1x256xf32, #tpu.memory_space<vmem>>, vector<1x1x256xf32>
    %37 = vector.shape_cast %36 : vector<1x1x256xf32> to vector<1x256xf32>
    %38 = vector.broadcast %37 : vector<1x256xf32> to vector<200x256xf32>
    %39 = arith.addf %35, %38 : vector<200x256xf32>
    %40 = vector.extract_strided_slice %39 {offsets = [0, 0], sizes = [200, 128], strides = [1, 1]} : vector<200x256xf32> to vector<200x128xf32>
    %41 = vector.extract_strided_slice %39 {offsets = [0, 128], sizes = [200, 128], strides = [1, 1]} : vector<200x256xf32> to vector<200x128xf32>
    %42 = arith.negf %41 : vector<200x128xf32>
    %43 = math.exp %42 : vector<200x128xf32>
    %cst_20 = arith.constant 1.000000e+00 : f32
    %44 = vector.broadcast %cst_20 : f32 to vector<200x128xf32>
    %45 = arith.addf %44, %43 : vector<200x128xf32>
    %46 = arith.divf %44, %45 : vector<200x128xf32>
    %47 = arith.mulf %40, %46 : vector<200x128xf32>
    %48 = arith.truncf %47 : vector<200x128xf32> to vector<200x128xbf16>
    %c0_21 = arith.constant 0 : index
    %c0_22 = arith.constant 0 : index
    %49 = vector.load %arg5[%c0_21, %c0_22] : memref<200x128xbf16, #tpu.memory_space<vmem>>, vector<200x128xbf16>
    tpu.vector_store %arg5[%c0_21, %c0_22], %48 {strides = array<i32>} : memref<200x128xbf16, #tpu.memory_space<vmem>>, vector<200x128xbf16>,
    return
  }
  func.func @transform_0(%arg0: i32) -> (i32, i32) {
    %c0_i32 = arith.constant 0 : i32
    %c0_i32_0 = arith.constant 0 : i32
    return %arg0, %c0_i32 : i32, i32
  }
  func.func @transform_1(%arg0: i32) -> (i32, i32) {
    %c0_i32 = arith.constant 0 : i32
    %c0_i32_0 = arith.constant 0 : i32
    %c0_i32_1 = arith.constant 0 : i32
    return %c0_i32, %c0_i32_0 : i32, i32
  }
  func.func @transform_2(%arg0: i32) -> (i32, i32, i32) {
    %c0_i32 = arith.constant 0 : i32
    %c0_i32_0 = arith.constant 0 : i32
    %c0_i32_1 = arith.constant 0 : i32
    %c0_i32_2 = arith.constant 0 : i32
    return %c0_i32, %c0_i32_0, %c0_i32_1 : i32, i32, i32
  }
  func.func @transform_3(%arg0: i32) -> (i32, i32, i32) {
    %c0_i32 = arith.constant 0 : i32
    %c0_i32_0 = arith.constant 0 : i32
    %c0_i32_1 = arith.constant 0 : i32
    %c0_i32_2 = arith.constant 0 : i32
    return %c0_i32, %c0_i32_0, %c0_i32_1 : i32, i32, i32
  }
  func.func @transform_4(%arg0: i32) -> (i32, i32) {
    %c0_i32 = arith.constant 0 : i32
    %c0_i32_0 = arith.constant 0 : i32
    return %arg0, %c0_i32 : i32, i32
  }
}

</mosaic_0001>

<bundles_post_ra>
// kernel: tpu_custom_call.1
= control target key start
LH: loop header
LB: loop body
LE: loop exit
PB: predicated region body
PF: predicated region fallthrough
CT: control target
= control target key end

     0   :  { %9 = vsyncpa [#allocation3], 0  ;;  %s2779_s0 = inlined_call_operand.vmem [shape: f32[200,16], index: 0, kind: input, shape index: {}]   ;;  %s2780_s1 = inlined_call_operand.vmem [shape: bf16[16,256], index: 1, kind: input, shape index: {}]   ;;  %s2781_s2 = inlined_call_operand.hbm [shape: bf16[2,128,256], index: 2, kind: input, shape index: {}]   ;;  %s2782_s3 = inlined_call_operand.vmem [shape: f32[3,1,256], index: 3, kind: input, shape index: {}]   ;;  %s2783_s4 = inlined_call_operand.hbm [shape: bf16[200,128], index: 4, kind: output, shape index: {}]  }
   0x1   :  { %10 = vsyncpa [#allocation4], 0  ;;  %s2184_s15 = smov [#allocation2]   ;;  %s2136_s19 = scalar_lea.hbm %s2781_s2, 4096 }
   0x2   :  { %s20_s16 = sshll.u32 %s2184_s15, 4  ;;  %p2137_p0 = scmp.ne.s32.totalorder %s2781_s2, %s2136_s19  ;;  %s21_s16 = int_to_ptr.vmem [resolvable:$true] %s20_s16 }
   0x3   :  { %p2140_p1 = scmp.lt.u32.totalorder %s2136_s19, %s2781_s2 }
   0x5   :  { %p2142_p2 = pnand %p2140_p1, %p2137_p0 }
   0x7   :  { %2145 = shalt.err (!%p2142_p2)
}
   0x8   :  { %s2146_s24 = scalar_lea.vmem %s21_s16, 4096  ;;  %p2151_p4 = scmp.lt.s32.totalorder %s21_s16, %s21_s16 }
   0x9   :  { %p2147_p3 = scmp.ne.s32.totalorder %s21_s16, %s2146_s24  ;;  %p2152_p5 = scmp.lt.s32.totalorder %s2146_s24, %s2146_s24 }
   0xb   :  { %p2153_p6 = por %p2152_p5, %p2151_p4 }
   0xd   :  { %p2154_p7 = pnand %p2153_p6, %p2147_p3 }
   0xf   :  { %2157 = shalt.err (!%p2154_p7)
}
  0x10   :  { %s2185_s25 = smov 128   ;;  %s2186_s26 = smov 8  }
  0x11   :  { %26 = dma.hbm_to_vmem [thread:$0]  %s2781_s2, 4096, %s21_s16, [#allocation3], %s2185_s25, %s2185_s25, %s2186_s26  }
  0x12   :  { %2180 = dma.done.wait [#allocation3], 4096  }
  0x13   :  { %2181 = vsyncadd [#allocation3], 4294963200  ;;  %v2187_v0 = vmov 0   ;;  %v1785_v1 = vld [vmem:[%s2780_s1 + $0x4] ss:$8 sps:$4 sm:$0xff]   ;;  %vm95_vm0 = vcmask 130048   ;;  %v75_v57 = vlaneseq }
  0x14   :  { %167 = vmatprep.mubr.bf16.mxu0 %v2187_v0  ;;  %237 = vmatprep.mubr.bf16.mxu1 %v2187_v0  ;;  %v1787_v2 = vld [vmem:[%s2780_s1] ss:$8 sps:$4 sm:$0xff]   ;;  %v47_v6 = vld [vmem:[%s2779_s0 + $0x70] sm:$0xff]  ;;  %v48_v7 = vld [vmem:[%s2779_s0 + $0x78] sm:$0xff] }
  0x15   :  { %v33_v3 = vld [vmem:[%s2779_s0] sm:$0xff]  ;;  %v34_v4 = vld [vmem:[%s2779_s0 + $0x8] sm:$0xff]  ;;  %135 = vmatprep.subr.bf16.mxu0 %v1785_v1  ;;  %1776 = vmatprep.subr.bf16.mxu1 %v1785_v1  ;;  %v65_v8 = vpack.c.bf16 %v48_v7, %v47_v6  ;;  %v35_v9 = vld [vmem:[%s2779_s0 + $0x10] sm:$0xff]  ;;  %v76_v58 = vshrl.u32 %v75_v57, 7 }
  0x16   :  { %v58_v5 = vpack.c.bf16 %v34_v4, %v33_v3  ;;  %136 = vmatpush1.bf16.msra.mxu0 %v1787_v2  ;;  %1777 = vmatpush1.bf16.msra.mxu1 %v1787_v2  ;;  %v36_v10 = vld [vmem:[%s2779_s0 + $0x18] sm:$0xff]  ;;  %v49_v11 = vld [vmem:[%s2779_s0 + $0x80] sm:$0xff]  ;;  %v50_v12 = vld [vmem:[%s2779_s0 + $0x88] sm:$0xff] }
  0x17   :  { %v59_v13 = vpack.c.bf16 %v36_v10, %v35_v9  ;;  %v1788_v14 = vld [vmem:[#allocation2] ss:$8 sps:$4 sm:$0xff]   ;;  %v1790_v15 = vld [vmem:[#allocation2 + $0x4] ss:$8 sps:$4 sm:$0xff]   ;;  %v66_v16 = vpack.c.bf16 %v50_v12, %v49_v11  ;;  %v1793_v17 = vld [vmem:[#allocation2 + $0x14] ss:$8 sps:$4 sm:$0xff]  }
  0x18   :  { %593 = vmatprep.subr.bf16.mxu1 %v1790_v15  ;;  %v37_v18 = vld [vmem:[%s2779_s0 + $0x20] sm:$0xff]  ;;  %v38_v19 = vld [vmem:[%s2779_s0 + $0x28] sm:$0xff]  ;;  %v51_v22 = vld [vmem:[%s2779_s0 + $0x90] sm:$0xff]  ;;  %v2337_v59 = vsub.s32 1, %v76_v58 }
  0x19   :  { %1533 = vmatmul.mubr.msk.bf16.vlgmr.msra.gmra.mrb[0].mxu0 %vm95_vm0, %v58_v5  ;;  %1540 = vmatmul.mubr.msk.bf16.vlgmr.msra.gmra.mrb[0].mxu1 %vm95_vm0, %v65_v8  ;;  %v1791_v20 = vld [vmem:[#allocation2 + $0x10] ss:$8 sps:$4 sm:$0xff]   ;;  %v1796_v21 = vld [vmem:[#allocation2 + $0x24] ss:$8 sps:$4 sm:$0xff]   ;;  %v1794_v24 = vld [vmem:[#allocation2 + $0x20] ss:$8 sps:$4 sm:$0xff]   ;;  %v60_v25 = vpack.c.bf16 %v38_v19, %v37_v18 }
  0x1a   :  { %177 = vmatprep.mubr.bf16.mxu0 %v2187_v0  ;;  %247 = vmatprep.mubr.bf16.mxu1 %v2187_v0  ;;  %v52_v23 = vld [vmem:[%s2779_s0 + $0x98] sm:$0xff]  ;;  %v39_v27 = vld [vmem:[%s2779_s0 + $0x30] sm:$0xff]  ;;  %v53_v29 = vld [vmem:[%s2779_s0 + $0xa0] sm:$0xff]  ;;  %v2355_v8 = vsub.s32 0, %v76_v58 }
  0x1b   :  { %594 = vmatpush1.bf16.msra.mxu1 %v1788_v14  ;;  %v67_v26 = vpack.c.bf16 %v52_v23, %v51_v22  ;;  %v40_v28 = vld [vmem:[%s2779_s0 + $0x38] sm:$0xff]  ;;  %v54_v30 = vld [vmem:[%s2779_s0 + $0xa8] sm:$0xff]  ;;  %v41_v33 = vld [vmem:[%s2779_s0 + $0x40] sm:$0xff] }
  0x1c   :  { %595 = vmatprep.subr.bf16.mxu1 %v1793_v17  ;;  %v61_v31 = vpack.c.bf16 %v40_v28, %v39_v27  ;;  %v68_v32 = vpack.c.bf16 %v54_v30, %v53_v29  ;;  %v42_v34 = vld [vmem:[%s2779_s0 + $0x48] sm:$0xff]  ;;  %v55_v35 = vld [vmem:[%s2779_s0 + $0xb0] sm:$0xff]  ;;  %v56_v36 = vld [vmem:[%s2779_s0 + $0xb8] sm:$0xff] }
  0x1d   :  { %v62_v37 = vpack.c.bf16 %v42_v34, %v41_v33  ;;  %v69_v38 = vpack.c.bf16 %v56_v36, %v55_v35  ;;  %v43_v39 = vld [vmem:[%s2779_s0 + $0x50] sm:$0xff]  ;;  %v44_v40 = vld [vmem:[%s2779_s0 + $0x58] sm:$0xff]  ;;  %v57_v41 = vld [vmem:[%s2779_s0 + $0xc0] sm:$0xff] }
  0x1e   :  { %v63_v42 = vpack.c.bf16 %v44_v40, %v43_v39  ;;  %v70_v43 = vpack.c.bf16 %v57_v41, %v57_v41  ;;  %v45_v44 = vld [vmem:[%s2779_s0 + $0x60] sm:$0xff]  ;;  %v46_v45 = vld [vmem:[%s2779_s0 + $0x68] sm:$0xff] }
  0x1f   :  { %596 = vmatpush1.bf16.msra.mxu1 %v1791_v20  ;;  %v64_v46 = vpack.c.bf16 %v46_v45, %v45_v44  ;;  %v1799_v47 = vld [vmem:[#allocation2 + $0x34] ss:$8 sps:$4 sm:$0xff]   ;;  %v1797_v48 = vld [vmem:[#allocation2 + $0x30] ss:$8 sps:$4 sm:$0xff]   ;;  %v1802_v49 = vld [vmem:[#allocation2 + $0x44] ss:$8 sps:$4 sm:$0xff]  }
  0x20   :  { %597 = vmatprep.subr.bf16.mxu1 %v1796_v21  ;;  %v1800_v50 = vld [vmem:[#allocation2 + $0x40] ss:$8 sps:$4 sm:$0xff]   ;;  %v1805_v51 = vld [vmem:[#allocation2 + $0x54] ss:$8 sps:$4 sm:$0xff]   ;;  %v1803_v52 = vld [vmem:[#allocation2 + $0x50] ss:$8 sps:$4 sm:$0xff]  }
  0x21   :  { %1534 = vmatmul.mubr.msk.bf16.gmra.mrb[4].mxu0 %vm95_vm0, %v59_v13  ;;  %1541 = vmatmul.mubr.msk.bf16.gmra.mrb[4].mxu1 %vm95_vm0, %v66_v16  ;;  %v1808_v53 = vld [vmem:[#allocation2 + $0x64] ss:$8 sps:$4 sm:$0xff]   ;;  %v1806_v54 = vld [vmem:[#allocation2 + $0x60] ss:$8 sps:$4 sm:$0xff]   ;;  %v1811_v55 = vld [vmem:[#allocation2 + $0x74] ss:$8 sps:$4 sm:$0xff]  }
  0x22   :  { %187 = vmatprep.mubr.bf16.mxu0 %v2187_v0  ;;  %257 = vmatprep.mubr.bf16.mxu1 %v2187_v0  ;;  %v1809_v56 = vld [vmem:[#allocation2 + $0x70] ss:$8 sps:$4 sm:$0xff]   ;;  %v1812_v12 = vld [vmem:[#allocation2 + $0x80] ss:$8 sps:$4 sm:$0xff]   ;;  %v1814_v15 = vld [vmem:[#allocation2 + $0x84] ss:$8 sps:$4 sm:$0xff]  }
  0x23   :  { %598 = vmatpush1.bf16.msra.mxu1 %v1794_v24  ;;  %v73_v60 = vld [vmem:[%s2782_s3] sm:$0x3]  ;;  %v1817_v17 = vld [vmem:[#allocation2 + $0x94] ss:$8 sps:$4 sm:$0xff]   ;;  %1052 = vmatprep.subr.bf16.mxu0 %v1814_v15  ;;  %v1820_v24 = vld [vmem:[#allocation2 + $0xa4] ss:$8 sps:$4 sm:$0xff]  }
  0x24   :  { %599 = vmatprep.subr.bf16.mxu1 %v1799_v47  ;;  %v2343_v61 = vrot.slane %v73_v60, %v2337_v59  ;;  %v2360_v19 = vrot.slane %v73_v60, %v2355_v8  ;;  %1053 = vmatpush1.bf16.msra.mxu0 %v1812_v12  ;;  %v1815_v21 = vld [vmem:[#allocation2 + $0x90] ss:$8 sps:$4 sm:$0xff]   ;;  %v1818_v36 = vld [vmem:[#allocation2 + $0xa0] ss:$8 sps:$4 sm:$0xff]  }
  0x25   :  { %1054 = vmatprep.subr.bf16.mxu0 %v1817_v17 }
  0x27   :  { %600 = vmatpush1.bf16.msra.mxu1 %v1797_v48 }
  0x28   :  { %601 = vmatprep.subr.bf16.mxu1 %v1802_v49  ;;  %1055 = vmatpush1.bf16.msra.mxu0 %v1815_v21 }
  0x29   :  { %1535 = vmatmul.mubr.msk.bf16.gmra.mrb[8].mxu0 %vm95_vm0, %v60_v25  ;;  %1542 = vmatmul.mubr.msk.bf16.gmra.mrb[8].mxu1 %vm95_vm0, %v67_v26 }
  0x2a   :  { %197 = vmatprep.mubr.bf16.mxu0 %v2187_v0  ;;  %267 = vmatprep.mubr.bf16.mxu1 %v2187_v0 }
  0x2b   :  { %602 = vmatpush1.bf16.msra.mxu1 %v1800_v50  ;;  %1056 = vmatprep.subr.bf16.mxu0 %v1820_v24 }
  0x2c   :  { %603 = vmatprep.subr.bf16.mxu1 %v1805_v51  ;;  %1057 = vmatpush1.bf16.msra.mxu0 %v1818_v36 }
  0x2f   :  { %604 = vmatpush1.bf16.msra.mxu1 %v1803_v52 }
  0x30   :  { %605 = vmatprep.subr.bf16.mxu1 %v1808_v53 }
  0x31   :  { %1536 = vmatmul.mubr.msk.bf16.gmra.mrb[12].mxu0 %vm95_vm0, %v61_v31  ;;  %1543 = vmatmul.mubr.msk.bf16.gmra.mrb[12].mxu1 %vm95_vm0, %v68_v32 }
  0x32   :  { %207 = vmatprep.mubr.bf16.mxu0 %v2187_v0  ;;  %277 = vmatprep.mubr.bf16.mxu1 %v2187_v0 }
  0x33   :  { %606 = vmatpush1.bf16.msra.mxu1 %v1806_v54 }
  0x34   :  { %607 = vmatprep.subr.bf16.mxu1 %v1811_v55 }
  0x37   :  { %608 = vmatpush1.bf16.msra.mxu1 %v1809_v56 }
  0x39   :  { %1537 = vmatmul.mubr.msk.bf16.gmra.mrb[16].mxu0 %vm95_vm0, %v62_v37  ;;  %1544 = vmatmul.mubr.msk.bf16.gmra.mrb[16].mxu1 %vm95_vm0, %v69_v38 }
  0x3a   :  { %217 = vmatprep.mubr.bf16.mxu0 %v2187_v0  ;;  %287 = vmatprep.mubr.bf16.mxu1 %v2187_v0 }
  0x41   :  { %1538 = vmatmul.mubr.msk.bf16.gmra.mrb[20].mxu0 %vm95_vm0, %v63_v42  ;;  %1545 = vmatmul.mubr.msk.bf16.gmra.mrb[20].mxu1 %vm95_vm0, %v70_v43 }
  0x42   :  { %227 = vmatprep.mubr.bf16.mxu0 %v2187_v0  ;;  %625 = vmatprep.mubr.bf16.mxu1 %v2187_v0 }
  0x49   :  { %1539 = vmatmul.mubr.msk.bf16.gmra.mrb[24].mxu0 %vm95_vm0, %v64_v46 }
  0x4a   :  { %1084 = vmatprep.mubr.bf16.mxu0 %v2187_v0 }
  0xec   :  { %v2345_v62 = vpop.f32.mrb[0].mxu0  ;;  %v2347_v1 = vpop.f32.mrb[0].mxu1 }
  0xed   :  { %v171_v63 = vpop.f32.mrb[1].mxu0  ;;  %v241_v4 = vpop.f32.mrb[1].mxu1 }
  0xee   :  { %v172_v2 = vadd.f32 %v171_v63, %v2343_v61  ;;  %v2350_v3 = vpop.f32.mrb[2].mxu0  ;;  %v242_v6 = vadd.f32 %v241_v4, %v2343_v61  ;;  %v2353_v7 = vpop.f32.mrb[2].mxu1 }
  0xef   :  { %v175_v5 = vpop.f32.mrb[3].mxu0  ;;  %v245_v11 = vpop.f32.mrb[3].mxu1 }
  0xf0   :  { %v1546_v9 = vmul.f32 -1.442695, %v172_v2  ;;  %v176_v10 = vadd.f32 %v175_v5, %v2343_v61  ;;  %v1560_v13 = vmul.f32 -1.442695, %v242_v6  ;;  %v246_v14 = vadd.f32 %v245_v11, %v2343_v61 }
  0xf2   :  { %1836 = vpow2.f32 %v1546_v9  ;;  %v1547_v16 = vmul.f32 -1.442695, %v176_v10  ;;  %v1561_v18 = vmul.f32 -1.442695, %v246_v14  ;;  %v170_v14 = vadd.f32 %v2345_v62, %v2360_v19 }
  0xf3   :  { %1838 = vpow2.f32 %v1560_v13  ;;  %v240_v62 = vadd.f32 %v2347_v1, %v2360_v19  ;;  %v174_v1 = vadd.f32 %v2350_v3, %v2360_v19  ;;  %v244_v3 = vadd.f32 %v2353_v7, %v2360_v19 }
  0xf4   :  { %1840 = vpow2.f32 %v1547_v16  ;;  %v2362_v20 = vpop.f32.mrb[4].mxu0  ;;  %v249_v23 = vpop.f32.mrb[4].mxu1 }
  0xf5   :  { %v181_v22 = vpop.f32.mrb[5].mxu0  ;;  %1842 = vpow2.f32 %v1561_v18  ;;  %v2368_v27 = vadd.f32 %v249_v23, %v2360_v19  ;;  %v251_v28 = vpop.f32.mrb[5].mxu1 }
  0xf6   :  { %v182_v25 = vadd.f32 %v181_v22, %v2343_v61  ;;  %v2365_v26 = vpop.f32.mrb[6].mxu0  ;;  %v252_v30 = vadd.f32 %v251_v28, %v2343_v61  ;;  %v253_v31 = vpop.f32.mrb[6].mxu1 }
  0xf7   :  { %v185_v29 = vpop.f32.mrb[7].mxu0  ;;  %v2373_v34 = vadd.f32 %v253_v31, %v2360_v19  ;;  %v255_v35 = vpop.f32.mrb[7].mxu1 }
  0xf8   :  { %v1548_v32 = vmul.f32 -1.442695, %v182_v25  ;;  %v186_v33 = vadd.f32 %v185_v29, %v2343_v61  ;;  %v1562_v37 = vmul.f32 -1.442695, %v252_v30  ;;  %v256_v38 = vadd.f32 %v255_v35, %v2343_v61 }
  0xfa   :  { %1844 = vpow2.f32 %v1548_v32  ;;  %v1549_v39 = vmul.f32 -1.442695, %v186_v33  ;;  %v1563_v40 = vmul.f32 -1.442695, %v256_v38 }
  0xfb   :  { %1846 = vpow2.f32 %v1562_v37 }
  0xfc   :  { %v1837_v41 = vpop.eup %1836  ;;  %1848 = vpow2.f32 %v1549_v39  ;;  %v2376_v42 = vpop.f32.mrb[8].mxu0 }
  0xfd   :  { %v1839_v43 = vpop.eup %1838  ;;  %v371_v44 = vadd.f32 1.0, %v1837_v41  ;;  %v191_v45 = vpop.f32.mrb[9].mxu0  ;;  %1850 = vpow2.f32 %v1563_v40 }
  0xfe   :  { %v259_v46 = vpop.f32.mrb[8].mxu1  ;;  %v1841_v47 = vpop.eup %1840  ;;  %v192_v48 = vadd.f32 %v191_v45, %v2343_v61  ;;  %v385_v50 = vadd.f32 1.0, %v1839_v43 }
  0xff   :  { %v2379_v49 = vpop.f32.mrb[10].mxu0  ;;  %v2382_v51 = vadd.f32 %v259_v46, %v2360_v19  ;;  %v261_v52 = vpop.f32.mrb[9].mxu1  ;;  %1852 = vrcp.f32 %v371_v44  ;;  %v372_v54 = vadd.f32 1.0, %v1841_v47 }
 0x100   :  { %v1843_v53 = vpop.eup %1842  ;;  %v195_v55 = vpop.f32.mrb[11].mxu0  ;;  %v262_v56 = vadd.f32 %v261_v52, %v2343_v61  ;;  %v1550_v58 = vmul.f32 -1.442695, %v192_v48  ;;  %1854 = vrcp.f32 %v385_v50 }
 0x101   :  { %v263_v57 = vpop.f32.mrb[10].mxu1  ;;  %v196_v60 = vadd.f32 %v195_v55, %v2343_v61  ;;  %v386_v63 = vadd.f32 1.0, %v1843_v53  ;;  %1856 = vrcp.f32 %v372_v54  ;;  %v180_v55 = vadd.f32 %v2362_v20, %v2360_v19 }
 0x102   :  { %v265_v2 = vpop.f32.mrb[11].mxu1  ;;  %v1564_v4 = vmul.f32 -1.442695, %v262_v56  ;;  %v2387_v5 = vadd.f32 %v263_v57, %v2360_v19  ;;  %1858 = vpow2.f32 %v1550_v58  ;;  %v184_v20 = vadd.f32 %v2365_v26, %v2360_v19 }
 0x103   :  { %v266_v6 = vadd.f32 %v265_v2, %v2343_v61  ;;  %v1551_v9 = vmul.f32 -1.442695, %v196_v60  ;;  %1860 = vrcp.f32 %v386_v63 }
 0x104   :  { %v1845_v11 = vpop.eup %1844  ;;  %v2390_v12 = vpop.f32.mrb[12].mxu0 }
 0x105   :  { %v1565_v10 = vmul.f32 -1.442695, %v266_v6  ;;  %1862 = vpow2.f32 %v1551_v9  ;;  %v1847_v13 = vpop.eup %1846  ;;  %v373_v15 = vadd.f32 1.0, %v1845_v11  ;;  %v201_v16 = vpop.f32.mrb[13].mxu0 }
 0x106   :  { %1864 = vpow2.f32 %v1564_v4  ;;  %v269_v17 = vpop.f32.mrb[12].mxu1  ;;  %v1849_v18 = vpop.eup %1848  ;;  %v202_v21 = vadd.f32 %v201_v16, %v2343_v61  ;;  %v387_v23 = vadd.f32 1.0, %v1847_v13 }
 0x107   :  { %v2395_v22 = vpop.f32.mrb[14].mxu0  ;;  %1866 = vpow2.f32 %v1565_v10  ;;  %v2398_v24 = vadd.f32 %v269_v17, %v2360_v19  ;;  %v271_v25 = vpop.f32.mrb[13].mxu1  ;;  %v374_v29 = vadd.f32 1.0, %v1849_v18 }
 0x108   :  { %v1851_v28 = vpop.eup %1850  ;;  %1868 = vrcp.f32 %v373_v15  ;;  %v205_v30 = vpop.f32.mrb[15].mxu0  ;;  %v272_v31 = vadd.f32 %v271_v25, %v2343_v61  ;;  %v1552_v33 = vmul.f32 -1.442695, %v202_v21 }
 0x109   :  { %v273_v32 = vpop.f32.mrb[14].mxu1  ;;  %v206_v35 = vadd.f32 %v205_v30, %v2343_v61  ;;  %1870 = vrcp.f32 %v387_v23  ;;  %v388_v36 = vadd.f32 1.0, %v1851_v28  ;;  %v1853_v38 = vpop.eup %1852 }
 0x10a   :  { %v275_v37 = vpop.f32.mrb[15].mxu1  ;;  %1872 = vrcp.f32 %v374_v29  ;;  %v1566_v39 = vmul.f32 -1.442695, %v272_v31  ;;  %v2405_v40 = vadd.f32 %v273_v32, %v2360_v19  ;;  %v1855_v43 = vpop.eup %1854  ;;  %v446_v45 = vmul.f32 %v1853_v38, %v170_v14 }
 0x10b   :  { %v276_v41 = vadd.f32 %v275_v37, %v2343_v61  ;;  %1874 = vpow2.f32 %v1552_v33  ;;  %v1553_v44 = vmul.f32 -1.442695, %v206_v35  ;;  %v1857_v46 = vpop.eup %1856  ;;  %v2410_v48 = vmul.f32 %v1855_v43, %v240_v62 }
 0x10c   :  { %1876 = vrcp.f32 %v388_v36  ;;  %v1859_v50 = vpop.eup %1858  ;;  %v2412_v52 = vpop.f32.mrb[16].mxu0  ;;  %v447_v53 = vmul.f32 %v1857_v46, %v174_v1 }
 0x10d   :  { %v1567_v47 = vmul.f32 -1.442695, %v276_v41  ;;  %1878 = vpow2.f32 %v1553_v44  ;;  %v1861_v54 = vpop.eup %1860  ;;  %v375_v56 = vadd.f32 1.0, %v1859_v50  ;;  %v211_v57 = vpop.f32.mrb[17].mxu0 }
 0x10e   :  { %1880 = vpow2.f32 %v1566_v39  ;;  %v279_v58 = vpop.f32.mrb[16].mxu1  ;;  %v212_v63 = vadd.f32 %v211_v57, %v2343_v61  ;;  %v2419_v2 = vpop.f32.mrb[18].mxu0  ;;  %v471_v4 = vpack.c.bf16 %v447_v53, %v446_v45  ;;  %v2433_v32 = vmul.f32 %v1861_v54, %v244_v3 }
 0x10f   :  { %v1863_v60 = vpop.eup %1862  ;;  %1882 = vpow2.f32 %v1567_v47  ;;  %v2422_v6 = vadd.f32 %v279_v58, %v2360_v19  ;;  %v281_v9 = vpop.f32.mrb[17].mxu1 }
 0x110   :  { %v1865_v10 = vpop.eup %1864  ;;  %1884 = vrcp.f32 %v375_v56  ;;  %v376_v7 = vadd.f32 1.0, %v1863_v60  ;;  %v215_v11 = vpop.f32.mrb[19].mxu0  ;;  %v282_v13 = vadd.f32 %v281_v9, %v2343_v61  ;;  %v1554_v16 = vmul.f32 -1.442695, %v212_v63  ;;  %626 = vmatmul.mubr.bf16.vlgmr.msra.gmra.mrb[24].mxu1 %v471_v4 }
 0x111   :  { %v283_v14 = vpop.f32.mrb[18].mxu1  ;;  %v1867_v15 = vpop.eup %1866  ;;  %v216_v17 = vadd.f32 %v215_v11, %v2343_v61  ;;  %v389_v18 = vadd.f32 1.0, %v1865_v10  ;;  %635 = vmatprep.mubr.bf16.mxu1 %v2187_v0  ;;  %v478_v41 = vpack.c.bf16 %v2433_v32, %v2410_v48  ;;  %v190_v56 = vadd.f32 %v2376_v42, %v2360_v19  ;;  %v1823_v48 = vld [vmem:[#allocation2 + $0xb4] ss:$8 sps:$4 sm:$0xff]  }
 0x112   :  { %v2429_v21 = vadd.f32 %v283_v14, %v2360_v19  ;;  %v285_v23 = vpop.f32.mrb[19].mxu1  ;;  %v1869_v25 = vpop.eup %1868  ;;  %1886 = vrcp.f32 %v376_v7  ;;  %v390_v26 = vadd.f32 1.0, %v1867_v15  ;;  %v1568_v28 = vmul.f32 -1.442695, %v282_v13  ;;  %1058 = vmatprep.subr.bf16.mxu0 %v1823_v48 }
 0x113   :  { %v286_v29 = vadd.f32 %v285_v23, %v2343_v61  ;;  %v1871_v30 = vpop.eup %1870  ;;  %1888 = vpow2.f32 %v1554_v16  ;;  %v1555_v62 = vmul.f32 -1.442695, %v216_v17  ;;  %v448_v31 = vmul.f32 %v1869_v25, %v180_v55 }
 0x114   :  { %v1873_v33 = vpop.eup %1872  ;;  %1890 = vrcp.f32 %v389_v18  ;;  %v2436_v35 = vmul.f32 %v1871_v30, %v2368_v27  ;;  %v2438_v37 = vpop.f32.mrb[20].mxu0  ;;  %v194_v11 = vadd.f32 %v2379_v49, %v2360_v19 }
 0x115   :  { %v1875_v36 = vpop.eup %1874  ;;  %1892 = vpow2.f32 %v1555_v62  ;;  %v449_v38 = vmul.f32 %v1873_v33, %v184_v20  ;;  %v1569_v39 = vmul.f32 -1.442695, %v286_v29  ;;  %v221_v44 = vpop.f32.mrb[21].mxu0 }
 0x116   :  { %v1877_v43 = vpop.eup %1876  ;;  %v377_v1 = vadd.f32 1.0, %v1875_v36  ;;  %1894 = vrcp.f32 %v390_v26  ;;  %v289_v45 = vpop.f32.mrb[20].mxu1  ;;  %v222_v47 = vadd.f32 %v221_v44, %v2343_v61 }
 0x117   :  { %v1879_v46 = vpop.eup %1878  ;;  %v2443_v50 = vpop.f32.mrb[22].mxu0  ;;  %v472_v27 = vpack.c.bf16 %v449_v38, %v448_v31  ;;  %1896 = vpow2.f32 %v1568_v28  ;;  %v2446_v53 = vadd.f32 %v289_v45, %v2360_v19  ;;  %v2456_v13 = vmul.f32 %v1877_v43, %v2373_v34 }
 0x118   :  { %v291_v54 = vpop.f32.mrb[21].mxu1  ;;  %v1881_v55 = vpop.eup %1880  ;;  %1898 = vrcp.f32 %v377_v1  ;;  %v378_v3 = vadd.f32 1.0, %v1879_v46  ;;  %v1556_v4 = vmul.f32 -1.442695, %v222_v47  ;;  %v200_v1 = vadd.f32 %v2390_v12, %v2360_v19 }
 0x119   :  { %v225_v57 = vpop.f32.mrb[23].mxu0  ;;  %v292_v58 = vadd.f32 %v291_v54, %v2343_v61  ;;  %v293_v60 = vpop.f32.mrb[22].mxu1  ;;  %636 = vmatmul.mubr.bf16.gmra.mrb[28].mxu1 %v472_v27  ;;  %v391_v10 = vadd.f32 1.0, %v1881_v55  ;;  %1900 = vpow2.f32 %v1569_v39  ;;  %v479_v18 = vpack.c.bf16 %v2456_v13, %v2436_v35  ;;  %v1826_v35 = vld [vmem:[#allocation2 + $0xc4] ss:$8 sps:$4 sm:$0xff]  }
 0x11a   :  { %v1883_v63 = vpop.eup %1882  ;;  %v226_v9 = vadd.f32 %v225_v57, %v2343_v61  ;;  %v294_v20 = vpop.f32.mrb[23].mxu1  ;;  %1902 = vrcp.f32 %v378_v3  ;;  %645 = vmatprep.mubr.bf16.mxu1 %v2187_v0  ;;  %v1827_v13 = vld [vmem:[#allocation2 + $0xd0] ss:$8 sps:$4 sm:$0xff]  }
 0x11b   :  { %v1885_v7 = vpop.eup %1884  ;;  %v392_v42 = vadd.f32 1.0, %v1883_v63  ;;  %1904 = vpow2.f32 %v1556_v4  ;;  %v1570_v16 = vmul.f32 -1.442695, %v292_v58 }
 0x11c   :  { %v1557_v14 = vmul.f32 -1.442695, %v226_v9  ;;  %v450_v15 = vmul.f32 %v1885_v7, %v190_v56  ;;  %v1887_v17 = vpop.eup %1886  ;;  %1906 = vrcp.f32 %v391_v10  ;;  %v2460_v25 = vpop.f32.mrb[24].mxu0  ;;  %v210_v7 = vadd.f32 %v2412_v52, %v2360_v19 }
 0x11d   :  { %v1889_v23 = vpop.eup %1888  ;;  %v451_v49 = vmul.f32 %v1887_v17, %v194_v11  ;;  %v231_v29 = vpop.f32.mrb[25].mxu0 }
 0x11e   :  { %1908 = vpow2.f32 %v1557_v14  ;;  %v1891_v26 = vpop.eup %1890  ;;  %v379_v28 = vadd.f32 1.0, %v1889_v23  ;;  %v232_v30 = vadd.f32 %v231_v29, %v2343_v61  ;;  %v2463_v62 = vpop.f32.mrb[26].mxu0 }
 0x11f   :  { %1910 = vrcp.f32 %v392_v42  ;;  %v1893_v34 = vpop.eup %1892  ;;  %v473_v31 = vpack.c.bf16 %v451_v49, %v450_v15  ;;  %v2466_v33 = vmul.f32 %v1891_v26, %v2382_v51  ;;  %v235_v39 = vpop.f32.mrb[27].mxu0  ;;  %v204_v51 = vadd.f32 %v2395_v22, %v2360_v19 }
 0x120   :  { %1912 = vpow2.f32 %v1570_v16  ;;  %v1895_v36 = vpop.eup %1894  ;;  %v380_v38 = vadd.f32 1.0, %v1893_v34  ;;  %v1558_v44 = vmul.f32 -1.442695, %v232_v30  ;;  %v236_v45 = vadd.f32 %v235_v39, %v2343_v61 }
 0x121   :  { %1914 = vrcp.f32 %v379_v28  ;;  %v1897_v43 = vpop.eup %1896  ;;  %646 = vmatmul.mubr.bf16.gmra.mrb[32].mxu1 %v473_v31  ;;  %v2472_v46 = vmul.f32 %v1895_v36, %v2387_v5  ;;  %v214_v15 = vadd.f32 %v2419_v2, %v2360_v19  ;;  %v220_v31 = vadd.f32 %v2438_v37, %v2360_v19 }
 0x122   :  { %v1899_v47 = vpop.eup %1898  ;;  %1916 = vrcp.f32 %v380_v38  ;;  %655 = vmatprep.mubr.bf16.mxu1 %v2187_v0  ;;  %v393_v27 = vadd.f32 1.0, %v1897_v43  ;;  %v1559_v55 = vmul.f32 -1.442695, %v236_v45  ;;  %v224_v38 = vadd.f32 %v2443_v50, %v2360_v19 }
 0x123   :  { %v1901_v54 = vpop.eup %1900  ;;  %1918 = vpow2.f32 %v1558_v44  ;;  %v452_v56 = vmul.f32 %v1899_v47, %v200_v1  ;;  %v480_v12 = vpack.c.bf16 %v2472_v46, %v2466_v33  ;;  %v230_v37 = vadd.f32 %v2460_v25, %v2360_v19  ;;  %v1830_v25 = vld [vmem:[#allocation2 + $0xe0] ss:$8 sps:$4 sm:$0xff]   ;;  %v1833_v33 = vld [vmem:[#allocation2 + $0xf0] ss:$8 sps:$4 sm:$0xff]  }
 0x124   :  { %v1903_v61 = vpop.eup %1902  ;;  %1920 = vrcp.f32 %v393_v27  ;;  %v394_v3 = vadd.f32 1.0, %v1901_v54  ;;  %v1571_v46 = vld [vmem:[%s2782_s3 + $0x2] sm:$0x3] }
 0x125   :  { %v1905_v5 = vpop.eup %1904  ;;  %1922 = vpow2.f32 %v1559_v55  ;;  %v453_v57 = vmul.f32 %v1903_v61, %v204_v51  ;;  %v234_v51 = vadd.f32 %v2463_v62, %v2360_v19  ;;  %v1821_v19 = vld [vmem:[#allocation2 + $0xb0] ss:$8 sps:$4 sm:$0xff]   ;;  %v1835_v62 = vld [vmem:[#allocation2 + $0xf4] ss:$8 sps:$4 sm:$0xff]  }
 0x126   :  { %v1907_v58 = vpop.eup %1906  ;;  %v381_v60 = vadd.f32 1.0, %v1905_v5  ;;  %1924 = vrcp.f32 %v394_v3  ;;  %1059 = vmatpush1.bf16.msra.mxu0 %v1821_v19 }
 0x127   :  { %v474_v63 = vpack.c.bf16 %v453_v57, %v452_v56  ;;  %v466_v4 = vmul.f32 %v1907_v58, %v2398_v24  ;;  %1060 = vmatprep.subr.bf16.mxu0 %v1826_v35  ;;  %v2518_v56 = vrot.slane %v1571_v46, %v2337_v59 }
 0x128   :  { %v1909_v22 = vpop.eup %1908  ;;  %1926 = vrcp.f32 %v381_v60 }
 0x129   :  { %v1911_v9 = vpop.eup %1910  ;;  %v382_v10 = vadd.f32 1.0, %v1909_v22  ;;  %656 = vmatmul.mubr.bf16.gmra.mrb[36].mxu1 %v474_v63 }
 0x12a   :  { %v1913_v20 = vpop.eup %1912  ;;  %v467_v11 = vmul.f32 %v1911_v9, %v2405_v40  ;;  %665 = vmatprep.mubr.bf16.mxu1 %v2187_v0 }
 0x12b   :  { %v1915_v42 = vpop.eup %1914  ;;  %1928 = vrcp.f32 %v382_v10  ;;  %v395_v14 = vadd.f32 1.0, %v1913_v20 }
 0x12c   :  { %v454_v16 = vmul.f32 %v1915_v42, %v210_v7  ;;  %v481_v24 = vpack.c.bf16 %v467_v11, %v466_v4  ;;  %v1917_v17 = vpop.eup %1916 }
 0x12d   :  { %1930 = vrcp.f32 %v395_v14  ;;  %v1919_v23 = vpop.eup %1918  ;;  %v455_v49 = vmul.f32 %v1917_v17, %v214_v15 }
 0x12e   :  { %v1921_v26 = vpop.eup %1920  ;;  %v383_v28 = vadd.f32 1.0, %v1919_v23 }
 0x12f   :  { %v1923_v52 = vpop.eup %1922  ;;  %v475_v29 = vpack.c.bf16 %v455_v49, %v454_v16  ;;  %v468_v40 = vmul.f32 %v1921_v26, %v2422_v6 }
 0x130   :  { %v1925_v34 = vpop.eup %1924  ;;  %1932 = vrcp.f32 %v383_v28  ;;  %v384_v30 = vadd.f32 1.0, %v1923_v52 }
 0x131   :  { %666 = vmatmul.mubr.bf16.gmra.mrb[40].mxu1 %v475_v29  ;;  %v469_v2 = vmul.f32 %v1925_v34, %v2429_v21 }
 0x132   :  { %v1927_v36 = vpop.eup %1926  ;;  %1934 = vrcp.f32 %v384_v30  ;;  %675 = vmatprep.mubr.bf16.mxu1 %v2187_v0  ;;  %v2533_v30 = vrot.slane %v1571_v46, %v2355_v8 }
 0x133   :  { %v456_v39 = vmul.f32 %v1927_v36, %v220_v31  ;;  %v482_v43 = vpack.c.bf16 %v469_v2, %v468_v40 }
 0x135   :  { %v1929_v1 = vpop.eup %1928 }
 0x136   :  { %v457_v6 = vmul.f32 %v1929_v1, %v224_v38 }
 0x137   :  { %v1931_v44 = vpop.eup %1930 }
 0x138   :  { %v476_v45 = vpack.c.bf16 %v457_v6, %v456_v39  ;;  %v470_v47 = vmul.f32 %v1931_v44, %v2446_v53  ;;  %v1829_v53 = vld [vmem:[#allocation2 + $0xd4] ss:$8 sps:$4 sm:$0xff]  }
 0x13a   :  { %676 = vmatmul.mubr.bf16.gmra.mrb[44].mxu1 %v476_v45  ;;  %v1933_v21 = vpop.eup %1932  ;;  %v483_v32 = vpack.c.bf16 %v470_v47, %v470_v47 }
 0x13b   :  { %685 = vmatprep.mubr.bf16.mxu1 %v2187_v0  ;;  %v458_v27 = vmul.f32 %v1933_v21, %v230_v37 }
 0x13c   :  { %v1935_v50 = vpop.eup %1934 }
 0x13d   :  { %v459_v54 = vmul.f32 %v1935_v50, %v234_v51 }
 0x13f   :  { %v477_v55 = vpack.c.bf16 %v459_v54, %v458_v27 }
 0x142   :  { %686 = vmatmul.mubr.bf16.gmra.mrb[48].mxu1 %v477_v55 }
 0x143   :  { %695 = vmatprep.mubr.bf16.mxu1 %v2187_v0 }
 0x14a   :  { %696 = vmatmul.mubr.bf16.gmra.mrb[52].mxu1 %v478_v41  ;;  %v1824_v41 = vld [vmem:[#allocation2 + $0xc0] ss:$8 sps:$4 sm:$0xff]  }
 0x14b   :  { %705 = vmatprep.mubr.bf16.mxu1 %v2187_v0  ;;  %1061 = vmatpush1.bf16.msra.mxu0 %v1824_v41 }
 0x14c   :  { %1062 = vmatprep.subr.bf16.mxu0 %v1829_v53 }
 0x14f   :  { %1063 = vmatpush1.bf16.msra.mxu0 %v1827_v13 }
 0x152   :  { %706 = vmatmul.mubr.bf16.gmra.mrb[56].mxu1 %v479_v18  ;;  %v1832_v18 = vld [vmem:[#allocation2 + $0xe4] ss:$8 sps:$4 sm:$0xff]  }
 0x153   :  { %715 = vmatprep.mubr.bf16.mxu1 %v2187_v0  ;;  %1064 = vmatprep.subr.bf16.mxu0 %v1832_v18 }
 0x154   :  { %1065 = vmatpush1.bf16.msra.mxu0 %v1830_v25 }
 0x155   :  { %1066 = vmatprep.subr.bf16.mxu0 %v1835_v62 }
 0x158   :  { %1067 = vmatpush1.bf16.msra.mxu0 %v1833_v33 }
 0x15a   :  { %716 = vmatmul.mubr.bf16.gmra.mrb[60].mxu1 %v480_v12 }
 0x15b   :  { %725 = vmatprep.mubr.bf16.mxu1 %v2187_v0 }
 0x162   :  { %726 = vmatmul.mubr.bf16.gmra.mrb[64].mxu1 %v481_v24 }
 0x163   :  { %735 = vmatprep.mubr.bf16.mxu1 %v2187_v0 }
 0x16a   :  { %736 = vmatmul.mubr.bf16.gmra.mrb[68].mxu1 %v482_v43 }
 0x16b   :  { %745 = vmatprep.mubr.bf16.mxu1 %v2187_v0 }
 0x172   :  { %746 = vmatmul.mubr.bf16.gmra.mrb[72].mxu1 %v483_v32 }
 0x1e3   :  { %v627_v12 = vpop.f32.mrb[24].mxu1 }
 0x1e4   :  { %v629_v61 = vpop.f32.mrb[25].mxu1  ;;  %v628_v44 = vadd.f32 %v627_v12, %v2533_v30 }
 0x1e5   :  { %v630_v3 = vadd.f32 %v629_v61, %v2518_v56  ;;  %v631_v5 = vpop.f32.mrb[26].mxu1 }
 0x1e6   :  { %v633_v57 = vpop.f32.mrb[27].mxu1  ;;  %v632_v21 = vadd.f32 %v631_v5, %v2533_v30 }
 0x1e7   :  { %v1588_v58 = vmul.f32 -1.442695, %v630_v3  ;;  %v634_v60 = vadd.f32 %v633_v57, %v2518_v56 }
 0x1e9   :  { %1936 = vpow2.f32 %v1588_v58  ;;  %v1589_v22 = vmul.f32 -1.442695, %v634_v60 }
 0x1eb   :  { %1938 = vpow2.f32 %v1589_v22 }
 0x1ec   :  { %v637_v63 = vpop.f32.mrb[28].mxu1 }
 0x1ed   :  { %v639_v4 = vpop.f32.mrb[29].mxu1  ;;  %v638_v62 = vadd.f32 %v637_v63, %v2533_v30 }
 0x1ee   :  { %v640_v9 = vadd.f32 %v639_v4, %v2518_v56  ;;  %v2523_v10 = vpop.f32.mrb[30].mxu1 }
 0x1ef   :  { %v643_v20 = vpop.f32.mrb[31].mxu1  ;;  %v642_v61 = vadd.f32 %v2523_v10, %v2533_v30 }
 0x1f0   :  { %v1590_v7 = vmul.f32 -1.442695, %v640_v9  ;;  %v644_v11 = vadd.f32 %v643_v20, %v2518_v56 }
 0x1f2   :  { %1940 = vpow2.f32 %v1590_v7  ;;  %v1591_v42 = vmul.f32 -1.442695, %v644_v11 }
 0x1f3   :  { %v1937_v14 = vpop.eup %1936 }
 0x1f4   :  { %1942 = vpow2.f32 %v1591_v42  ;;  %v2526_v15 = vpop.f32.mrb[32].mxu1  ;;  %v829_v16 = vadd.f32 1.0, %v1937_v14 }
 0x1f5   :  { %v649_v24 = vpop.f32.mrb[33].mxu1  ;;  %v1939_v17 = vpop.eup %1938  ;;  %v648_v14 = vadd.f32 %v2526_v15, %v2533_v30 }
 0x1f6   :  { %v650_v23 = vadd.f32 %v649_v24, %v2518_v56  ;;  %v2529_v49 = vpop.f32.mrb[34].mxu1  ;;  %1944 = vrcp.f32 %v829_v16  ;;  %v830_v26 = vadd.f32 1.0, %v1939_v17 }
 0x1f7   :  { %v653_v28 = vpop.f32.mrb[35].mxu1 }
 0x1f8   :  { %v1592_v52 = vmul.f32 -1.442695, %v650_v23  ;;  %v654_v29 = vadd.f32 %v653_v28, %v2518_v56  ;;  %1946 = vrcp.f32 %v830_v26  ;;  %v652_v23 = vadd.f32 %v2529_v49, %v2533_v30 }
 0x1fa   :  { %1948 = vpow2.f32 %v1592_v52  ;;  %v1593_v40 = vmul.f32 -1.442695, %v654_v29 }
 0x1fc   :  { %v1941_v34 = vpop.eup %1940  ;;  %1950 = vpow2.f32 %v1593_v40  ;;  %v2535_v31 = vpop.f32.mrb[36].mxu1 }
 0x1fd   :  { %v831_v2 = vadd.f32 1.0, %v1941_v34  ;;  %v659_v36 = vpop.f32.mrb[37].mxu1 }
 0x1fe   :  { %v1943_v38 = vpop.eup %1942  ;;  %v660_v39 = vadd.f32 %v659_v36, %v2518_v56  ;;  %v2538_v43 = vpop.f32.mrb[38].mxu1 }
 0x1ff   :  { %1952 = vrcp.f32 %v831_v2  ;;  %v832_v1 = vadd.f32 1.0, %v1943_v38  ;;  %v663_v6 = vpop.f32.mrb[39].mxu1 }
 0x200   :  { %v1594_v45 = vmul.f32 -1.442695, %v660_v39  ;;  %v664_v47 = vadd.f32 %v663_v6, %v2518_v56  ;;  %v1945_v37 = vpop.eup %1944 }
 0x201   :  { %1954 = vrcp.f32 %v832_v1  ;;  %v904_v27 = vmul.f32 %v1945_v37, %v628_v44  ;;  %v658_v44 = vadd.f32 %v2535_v31, %v2533_v30 }
 0x202   :  { %1956 = vpow2.f32 %v1594_v45  ;;  %v1595_v51 = vmul.f32 -1.442695, %v664_v47  ;;  %v1947_v50 = vpop.eup %1946 }
 0x203   :  { %v905_v19 = vmul.f32 %v1947_v50, %v632_v21  ;;  %v662_v21 = vadd.f32 %v2538_v43, %v2533_v30 }
 0x204   :  { %v1949_v54 = vpop.eup %1948  ;;  %1958 = vpow2.f32 %v1595_v51  ;;  %v2543_v55 = vpop.f32.mrb[40].mxu1 }
 0x205   :  { %v833_v48 = vadd.f32 1.0, %v1949_v54  ;;  %v669_v32 = vpop.f32.mrb[41].mxu1  ;;  %v929_v13 = vpack.c.bf16 %v905_v19, %v904_v27 }
 0x206   :  { %v1951_v35 = vpop.eup %1950  ;;  %v670_v41 = vadd.f32 %v669_v32, %v2518_v56  ;;  %v2546_v53 = vpop.f32.mrb[42].mxu1 }
 0x207   :  { %1960 = vrcp.f32 %v833_v48  ;;  %v834_v18 = vadd.f32 1.0, %v1951_v35  ;;  %v673_v25 = vpop.f32.mrb[43].mxu1  ;;  %1085 = vmatmul.mubr.bf16.vlgmr.msra.gmra.mrb[28].mxu0 %v929_v13 }
 0x208   :  { %v1596_v33 = vmul.f32 -1.442695, %v670_v41  ;;  %v674_v46 = vadd.f32 %v673_v25, %v2518_v56  ;;  %1094 = vmatprep.mubr.bf16.mxu0 %v2187_v0 }
 0x209   :  { %v1953_v12 = vpop.eup %1952  ;;  %1962 = vrcp.f32 %v834_v18 }
 0x20a   :  { %1964 = vpow2.f32 %v1596_v33  ;;  %v1597_v3 = vmul.f32 -1.442695, %v674_v46  ;;  %v906_v5 = vmul.f32 %v1953_v12, %v638_v62  ;;  %v668_v62 = vadd.f32 %v2543_v55, %v2533_v30 }
 0x20b   :  { %v1955_v57 = vpop.eup %1954 }
 0x20c   :  { %v1957_v58 = vpop.eup %1956  ;;  %1966 = vpow2.f32 %v1597_v3  ;;  %v907_v22 = vmul.f32 %v1955_v57, %v642_v61  ;;  %v672_v61 = vadd.f32 %v2546_v53, %v2533_v30 }
 0x20d   :  { %v2553_v60 = vpop.f32.mrb[44].mxu1  ;;  %v835_v63 = vadd.f32 1.0, %v1957_v58 }
 0x20e   :  { %v679_v4 = vpop.f32.mrb[45].mxu1  ;;  %v1959_v9 = vpop.eup %1958  ;;  %v930_v11 = vpack.c.bf16 %v907_v22, %v906_v5 }
 0x20f   :  { %v680_v20 = vadd.f32 %v679_v4, %v2518_v56  ;;  %v2556_v7 = vpop.f32.mrb[46].mxu1  ;;  %1968 = vrcp.f32 %v835_v63  ;;  %v836_v42 = vadd.f32 1.0, %v1959_v9 }
 0x210   :  { %v683_v10 = vpop.f32.mrb[47].mxu1  ;;  %1095 = vmatmul.mubr.bf16.gmra.mrb[32].mxu0 %v930_v11 }
 0x211   :  { %v1598_v16 = vmul.f32 -1.442695, %v680_v20  ;;  %v684_v24 = vadd.f32 %v683_v10, %v2518_v56  ;;  %v1961_v17 = vpop.eup %1960  ;;  %1970 = vrcp.f32 %v836_v42  ;;  %1104 = vmatprep.mubr.bf16.mxu0 %v2187_v0 }
 0x212   :  { %v908_v28 = vmul.f32 %v1961_v17, %v648_v14  ;;  %v678_v14 = vadd.f32 %v2553_v60, %v2533_v30 }
 0x213   :  { %1972 = vpow2.f32 %v1598_v16  ;;  %v1599_v26 = vmul.f32 -1.442695, %v684_v24  ;;  %v1963_v52 = vpop.eup %1962 }
 0x214   :  { %v1965_v29 = vpop.eup %1964  ;;  %v909_v15 = vmul.f32 %v1963_v52, %v652_v23  ;;  %v682_v23 = vadd.f32 %v2556_v7, %v2533_v30 }
 0x215   :  { %1974 = vpow2.f32 %v1599_v26  ;;  %v2564_v40 = vpop.f32.mrb[48].mxu1  ;;  %v837_v34 = vadd.f32 1.0, %v1965_v29 }
 0x216   :  { %v689_v2 = vpop.f32.mrb[49].mxu1  ;;  %v1967_v36 = vpop.eup %1966  ;;  %v931_v1 = vpack.c.bf16 %v909_v15, %v908_v28 }
 0x217   :  { %v690_v38 = vadd.f32 %v689_v2, %v2518_v56  ;;  %v2567_v39 = vpop.f32.mrb[50].mxu1  ;;  %1976 = vrcp.f32 %v837_v34  ;;  %v838_v6 = vadd.f32 1.0, %v1967_v36 }
 0x218   :  { %v693_v49 = vpop.f32.mrb[51].mxu1  ;;  %1105 = vmatmul.mubr.bf16.gmra.mrb[36].mxu0 %v931_v1 }
 0x219   :  { %v1600_v45 = vmul.f32 -1.442695, %v690_v38  ;;  %v694_v47 = vadd.f32 %v693_v49, %v2518_v56  ;;  %v1969_v37 = vpop.eup %1968  ;;  %1978 = vrcp.f32 %v838_v6  ;;  %1114 = vmatprep.mubr.bf16.mxu0 %v2187_v0 }
 0x21a   :  { %v910_v27 = vmul.f32 %v1969_v37, %v658_v44  ;;  %v688_v44 = vadd.f32 %v2564_v40, %v2533_v30 }
 0x21b   :  { %1980 = vpow2.f32 %v1600_v45  ;;  %v1601_v51 = vmul.f32 -1.442695, %v694_v47  ;;  %v1971_v50 = vpop.eup %1970 }
 0x21c   :  { %v911_v31 = vmul.f32 %v1971_v50, %v662_v21  ;;  %v692_v21 = vadd.f32 %v2567_v39, %v2533_v30 }
 0x21d   :  { %v1973_v54 = vpop.eup %1972  ;;  %1982 = vpow2.f32 %v1601_v51  ;;  %v2575_v19 = vpop.f32.mrb[52].mxu1 }
 0x21e   :  { %v839_v48 = vadd.f32 1.0, %v1973_v54  ;;  %v699_v32 = vpop.f32.mrb[53].mxu1  ;;  %v932_v18 = vpack.c.bf16 %v911_v31, %v910_v27 }
 0x21f   :  { %v1975_v35 = vpop.eup %1974  ;;  %v700_v41 = vadd.f32 %v699_v32, %v2518_v56  ;;  %v2578_v13 = vpop.f32.mrb[54].mxu1 }
 0x220   :  { %1984 = vrcp.f32 %v839_v48  ;;  %v840_v25 = vadd.f32 1.0, %v1975_v35  ;;  %v703_v43 = vpop.f32.mrb[55].mxu1  ;;  %1115 = vmatmul.mubr.bf16.gmra.mrb[40].mxu0 %v932_v18 }
 0x221   :  { %v1602_v33 = vmul.f32 -1.442695, %v700_v41  ;;  %v704_v46 = vadd.f32 %v703_v43, %v2518_v56  ;;  %v1977_v12 = vpop.eup %1976  ;;  %1124 = vmatprep.mubr.bf16.mxu0 %v2187_v0 }
 0x222   :  { %1986 = vrcp.f32 %v840_v25  ;;  %v912_v5 = vmul.f32 %v1977_v12, %v668_v62  ;;  %v698_v62 = vadd.f32 %v2575_v19, %v2533_v30 }
 0x223   :  { %1988 = vpow2.f32 %v1602_v33  ;;  %v1603_v3 = vmul.f32 -1.442695, %v704_v46  ;;  %v1979_v57 = vpop.eup %1978 }
 0x224   :  { %v913_v55 = vmul.f32 %v1979_v57, %v672_v61  ;;  %v702_v61 = vadd.f32 %v2578_v13, %v2533_v30 }
 0x225   :  { %v1981_v58 = vpop.eup %1980  ;;  %1990 = vpow2.f32 %v1603_v3  ;;  %v2586_v22 = vpop.f32.mrb[56].mxu1 }
 0x226   :  { %v841_v63 = vadd.f32 1.0, %v1981_v58  ;;  %v709_v4 = vpop.f32.mrb[57].mxu1  ;;  %v933_v42 = vpack.c.bf16 %v913_v55, %v912_v5 }
 0x227   :  { %v1983_v9 = vpop.eup %1982  ;;  %v710_v20 = vadd.f32 %v709_v4, %v2518_v56  ;;  %v2589_v11 = vpop.f32.mrb[58].mxu1 }
 0x228   :  { %1992 = vrcp.f32 %v841_v63  ;;  %v842_v10 = vadd.f32 1.0, %v1983_v9  ;;  %v713_v53 = vpop.f32.mrb[59].mxu1  ;;  %1125 = vmatmul.mubr.bf16.gmra.mrb[44].mxu0 %v933_v42 }
 0x229   :  { %v1604_v16 = vmul.f32 -1.442695, %v710_v20  ;;  %v714_v24 = vadd.f32 %v713_v53, %v2518_v56  ;;  %1134 = vmatprep.mubr.bf16.mxu0 %v2187_v0 }
 0x22a   :  { %v1985_v17 = vpop.eup %1984  ;;  %1994 = vrcp.f32 %v842_v10 }
 0x22b   :  { %1996 = vpow2.f32 %v1604_v16  ;;  %v1605_v26 = vmul.f32 -1.442695, %v714_v24  ;;  %v914_v28 = vmul.f32 %v1985_v17, %v678_v14  ;;  %v708_v14 = vadd.f32 %v2586_v22, %v2533_v30 }
 0x22c   :  { %v1987_v52 = vpop.eup %1986 }
 0x22d   :  { %v1989_v29 = vpop.eup %1988  ;;  %1998 = vpow2.f32 %v1605_v26  ;;  %v2597_v15 = vpop.f32.mrb[60].mxu1  ;;  %v915_v60 = vmul.f32 %v1987_v52, %v682_v23  ;;  %v712_v23 = vadd.f32 %v2589_v11, %v2533_v30 }
 0x22e   :  { %v843_v34 = vadd.f32 1.0, %v1989_v29  ;;  %v719_v2 = vpop.f32.mrb[61].mxu1  ;;  %v718_v11 = vadd.f32 %v2597_v15, %v2533_v30 }
 0x22f   :  { %v1991_v36 = vpop.eup %1990  ;;  %v720_v38 = vadd.f32 %v719_v2, %v2518_v56  ;;  %v2600_v1 = vpop.f32.mrb[62].mxu1  ;;  %v934_v6 = vpack.c.bf16 %v915_v60, %v914_v28 }
 0x230   :  { %2000 = vrcp.f32 %v843_v34  ;;  %v844_v49 = vadd.f32 1.0, %v1991_v36  ;;  %v723_v7 = vpop.f32.mrb[63].mxu1 }
 0x231   :  { %v1606_v45 = vmul.f32 -1.442695, %v720_v38  ;;  %v724_v47 = vadd.f32 %v723_v7, %v2518_v56  ;;  %1135 = vmatmul.mubr.bf16.gmra.mrb[48].mxu0 %v934_v6 }
 0x232   :  { %v1993_v37 = vpop.eup %1992  ;;  %2002 = vrcp.f32 %v844_v49  ;;  %1144 = vmatprep.mubr.bf16.mxu0 %v2187_v0 }
 0x233   :  { %2004 = vpow2.f32 %v1606_v45  ;;  %v1607_v51 = vmul.f32 -1.442695, %v724_v47  ;;  %v916_v27 = vmul.f32 %v1993_v37, %v688_v44  ;;  %v722_v37 = vadd.f32 %v2600_v1, %v2533_v30 }
 0x234   :  { %v1995_v50 = vpop.eup %1994 }
 0x235   :  { %v1997_v54 = vpop.eup %1996  ;;  %2006 = vpow2.f32 %v1607_v51  ;;  %v2608_v31 = vpop.f32.mrb[64].mxu1  ;;  %v917_v40 = vmul.f32 %v1995_v50, %v692_v21 }
 0x236   :  { %v845_v48 = vadd.f32 1.0, %v1997_v54  ;;  %v729_v32 = vpop.f32.mrb[65].mxu1  ;;  %v728_v15 = vadd.f32 %v2608_v31, %v2533_v30 }
 0x237   :  { %v1999_v35 = vpop.eup %1998  ;;  %v730_v41 = vadd.f32 %v729_v32, %v2518_v56  ;;  %v2611_v18 = vpop.f32.mrb[66].mxu1  ;;  %v935_v25 = vpack.c.bf16 %v917_v40, %v916_v27 }
 0x238   :  { %2008 = vrcp.f32 %v845_v48  ;;  %v846_v43 = vadd.f32 1.0, %v1999_v35  ;;  %v733_v39 = vpop.f32.mrb[67].mxu1  ;;  %v732_v1 = vadd.f32 %v2611_v18, %v2533_v30 }
 0x239   :  { %v1608_v33 = vmul.f32 -1.442695, %v730_v41  ;;  %v734_v46 = vadd.f32 %v733_v39, %v2518_v56  ;;  %1145 = vmatmul.mubr.bf16.gmra.mrb[52].mxu0 %v935_v25 }
 0x23a   :  { %v2001_v12 = vpop.eup %2000  ;;  %2010 = vrcp.f32 %v846_v43  ;;  %1154 = vmatprep.mubr.bf16.mxu0 %v2187_v0 }
 0x23b   :  { %2012 = vpow2.f32 %v1608_v33  ;;  %v1609_v3 = vmul.f32 -1.442695, %v734_v46  ;;  %v918_v5 = vmul.f32 %v2001_v12, %v698_v62 }
 0x23c   :  { %v2003_v57 = vpop.eup %2002 }
 0x23d   :  { %v2005_v58 = vpop.eup %2004  ;;  %2014 = vpow2.f32 %v1609_v3  ;;  %v2619_v55 = vpop.f32.mrb[68].mxu1  ;;  %v919_v19 = vmul.f32 %v2003_v57, %v702_v61 }
 0x23e   :  { %v847_v63 = vadd.f32 1.0, %v2005_v58  ;;  %v739_v4 = vpop.f32.mrb[69].mxu1  ;;  %v738_v33 = vadd.f32 %v2619_v55, %v2533_v30  ;;  %v1613_v55 = vld [vmem:[%s2782_s3 + $0x4] sm:$0x3]  ;;  %s2188_s3 = smov [#allocation5]  }
 0x23f   :  { %v2007_v9 = vpop.eup %2006  ;;  %v740_v20 = vadd.f32 %v739_v4, %v2518_v56  ;;  %v2622_v42 = vpop.f32.mrb[70].mxu1  ;;  %v936_v10 = vpack.c.bf16 %v919_v19, %v918_v5  ;;  %s1519_s6 = sshll.u32 %s2188_s3, 4  ;;  %s1520_s6 = int_to_ptr.vmem [resolvable:$true] %s1519_s6 }
 0x240   :  { %2016 = vrcp.f32 %v847_v63  ;;  %v848_v53 = vadd.f32 1.0, %v2007_v9  ;;  %v743_v13 = vpop.f32.mrb[71].mxu1  ;;  %v742_v46 = vadd.f32 %v2622_v42, %v2533_v30  ;;  %v2652_v63 = vrot.slane %v1613_v55, %v2337_v59  ;;  %s2158_s7 = scalar_lea.vmem %s1520_s6, 1600  ;;  %p2163_p9 = scmp.lt.s32.totalorder %s1520_s6, %s1520_s6 }
 0x241   :  { %v1610_v16 = vmul.f32 -1.442695, %v740_v20  ;;  %v744_v24 = vadd.f32 %v743_v13, %v2518_v56  ;;  %1155 = vmatmul.mubr.bf16.gmra.mrb[56].mxu0 %v936_v10  ;;  %p2159_p8 = scmp.ne.s32.totalorder %s1520_s6, %s2158_s7  ;;  %p2164_p10 = scmp.lt.s32.totalorder %s2158_s7, %s2158_s7 }
 0x242   :  { %v2009_v17 = vpop.eup %2008  ;;  %2018 = vrcp.f32 %v848_v53  ;;  %1164 = vmatprep.mubr.bf16.mxu0 %v2187_v0 }
 0x243   :  { %2020 = vpow2.f32 %v1610_v16  ;;  %v1611_v26 = vmul.f32 -1.442695, %v744_v24  ;;  %v920_v28 = vmul.f32 %v2009_v17, %v708_v14  ;;  %p2165_p11 = por %p2164_p10, %p2163_p9 }
 0x244   :  { %v2011_v52 = vpop.eup %2010 }
 0x245   :  { %v2013_v29 = vpop.eup %2012  ;;  %2022 = vpow2.f32 %v1611_v26  ;;  %v747_v60 = vpop.f32.mrb[72].mxu1  ;;  %v921_v34 = vmul.f32 %v2011_v52, %v712_v23  ;;  %p2166_p12 = pnand %p2165_p11, %p2159_p8 }
 0x246   :  { %v849_v22 = vadd.f32 1.0, %v2013_v29  ;;  %v749_v2 = vpop.f32.mrb[73].mxu1  ;;  %v748_v5 = vadd.f32 %v747_v60, %v2533_v30 }
 0x247   :  { %v2015_v36 = vpop.eup %2014  ;;  %v750_v38 = vadd.f32 %v749_v2, %v2518_v56  ;;  %v751_v6 = vpop.f32.mrb[74].mxu1  ;;  %v937_v49 = vpack.c.bf16 %v921_v34, %v920_v28 }
 0x248   :  { %2024 = vrcp.f32 %v849_v22  ;;  %v850_v7 = vadd.f32 1.0, %v2015_v36  ;;  %v752_v44 = vpop.f32.mrb[75].mxu1 }
 0x249   :  { %v1612_v45 = vmul.f32 -1.442695, %v750_v38  ;;  %1165 = vmatmul.mubr.bf16.gmra.mrb[60].mxu0 %v937_v49 }
 0x24a   :  { %v2017_v47 = vpop.eup %2016  ;;  %2026 = vrcp.f32 %v850_v7  ;;  %1174 = vmatprep.mubr.bf16.mxu0 %v2187_v0 }
 0x24b   :  { %2028 = vpow2.f32 %v1612_v45  ;;  %v922_v21 = vmul.f32 %v2017_v47, %v718_v11  ;;  %v2667_v11 = vrot.slane %v1613_v55, %v2355_v8 }
 0x24c   :  { %v2019_v56 = vpop.eup %2018 }
 0x24d   :  { %v2021_v51 = vpop.eup %2020  ;;  %v923_v27 = vmul.f32 %v2019_v56, %v722_v37 }
 0x24e   :  { %v851_v50 = vadd.f32 1.0, %v2021_v51 }
 0x24f   :  { %v2023_v54 = vpop.eup %2022  ;;  %v938_v40 = vpack.c.bf16 %v923_v27, %v922_v21 }
 0x250   :  { %2030 = vrcp.f32 %v851_v50  ;;  %v852_v48 = vadd.f32 1.0, %v2023_v54 }
 0x251   :  { %1175 = vmatmul.mubr.bf16.gmra.mrb[64].mxu0 %v938_v40 }
 0x252   :  { %v2025_v32 = vpop.eup %2024  ;;  %2032 = vrcp.f32 %v852_v48  ;;  %1184 = vmatprep.mubr.bf16.mxu0 %v2187_v0 }
 0x253   :  { %v924_v35 = vmul.f32 %v2025_v32, %v728_v15 }
 0x254   :  { %v2027_v41 = vpop.eup %2026 }
 0x255   :  { %v2029_v25 = vpop.eup %2028  ;;  %v925_v43 = vmul.f32 %v2027_v41, %v732_v1 }
 0x256   :  { %v853_v39 = vadd.f32 1.0, %v2029_v25 }
 0x257   :  { %v939_v62 = vpack.c.bf16 %v925_v43, %v924_v35 }
 0x258   :  { %2034 = vrcp.f32 %v853_v39 }
 0x259   :  { %1185 = vmatmul.mubr.bf16.gmra.mrb[68].mxu0 %v939_v62 }
 0x25a   :  { %v2031_v31 = vpop.eup %2030  ;;  %1194 = vmatprep.mubr.bf16.mxu0 %v2187_v0 }
 0x25b   :  { %v926_v12 = vmul.f32 %v2031_v31, %v738_v33 }
 0x25c   :  { %v2033_v61 = vpop.eup %2032 }
 0x25d   :  { %v927_v18 = vmul.f32 %v2033_v61, %v742_v46 }
 0x25f   :  { %v940_v3 = vpack.c.bf16 %v927_v18, %v926_v12 }
 0x261   :  { %1195 = vmatmul.mubr.bf16.gmra.mrb[72].mxu0 %v940_v3 }
 0x262   :  { %v2035_v57 = vpop.eup %2034  ;;  %1204 = vmatprep.mubr.bf16.mxu0 %v2187_v0 }
 0x263   :  { %v928_v58 = vmul.f32 %v2035_v57, %v748_v5 }
 0x265   :  { %v941_v19 = vpack.c.bf16 %v928_v58, %v928_v58 }
 0x269   :  { %1205 = vmatmul.mubr.bf16.gmra.mrb[76].mxu0 %v941_v19 }
 0x2da   :  { %v1086_v4 = vpop.f32.mrb[28].mxu0 }
 0x2db   :  { %v1088_v9 = vpop.f32.mrb[29].mxu0  ;;  %v1087_v54 = vadd.f32 %v1086_v4, %v2667_v11 }
 0x2dc   :  { %v1089_v20 = vadd.f32 %v1088_v9, %v2652_v63  ;;  %v1090_v42 = vpop.f32.mrb[30].mxu0 }
 0x2dd   :  { %v1092_v30 = vpop.f32.mrb[31].mxu0  ;;  %v1091_v32 = vadd.f32 %v1090_v42, %v2667_v11 }
 0x2de   :  { %v1630_v10 = vmul.f32 -1.442695, %v1089_v20  ;;  %v1093_v53 = vadd.f32 %v1092_v30, %v2652_v63 }
 0x2e0   :  { %2036 = vpow2.f32 %v1630_v10  ;;  %v1631_v0 = vmul.f32 -1.442695, %v1093_v53 }
 0x2e2   :  { %2038 = vpow2.f32 %v1631_v0 }
 0x2e3   :  { %v1096_v13 = vpop.f32.mrb[32].mxu0 }
 0x2e4   :  { %v1098_v14 = vpop.f32.mrb[33].mxu0  ;;  %v1097_v3 = vadd.f32 %v1096_v13, %v2667_v11 }
 0x2e5   :  { %v1099_v16 = vadd.f32 %v1098_v14, %v2652_v63  ;;  %v2657_v24 = vpop.f32.mrb[34].mxu0 }
 0x2e6   :  { %v1102_v59 = vpop.f32.mrb[35].mxu0  ;;  %v1101_v55 = vadd.f32 %v2657_v24, %v2667_v11 }
 0x2e7   :  { %v1632_v17 = vmul.f32 -1.442695, %v1099_v16  ;;  %v1103_v23 = vadd.f32 %v1102_v59, %v2652_v63 }
 0x2e9   :  { %2040 = vpow2.f32 %v1632_v17  ;;  %v1633_v26 = vmul.f32 -1.442695, %v1103_v23 }
 0x2ea   :  { %v2037_v28 = vpop.eup %2036 }
 0x2eb   :  { %2042 = vpow2.f32 %v1633_v26  ;;  %v2660_v52 = vpop.f32.mrb[36].mxu0  ;;  %v1288_v29 = vadd.f32 1.0, %v2037_v28 }
 0x2ec   :  { %v1108_v60 = vpop.f32.mrb[37].mxu0  ;;  %v2039_v34 = vpop.eup %2038  ;;  %v1107_v24 = vadd.f32 %v2660_v52, %v2667_v11 }
 0x2ed   :  { %v1109_v22 = vadd.f32 %v1108_v60, %v2652_v63  ;;  %v2663_v2 = vpop.f32.mrb[38].mxu0  ;;  %2044 = vrcp.f32 %v1288_v29  ;;  %v1289_v36 = vadd.f32 1.0, %v2039_v34 }
 0x2ee   :  { %v1112_v38 = vpop.f32.mrb[39].mxu0  ;;  %v1111_v60 = vadd.f32 %v2663_v2, %v2667_v11 }
 0x2ef   :  { %v1634_v6 = vmul.f32 -1.442695, %v1109_v22  ;;  %v1113_v49 = vadd.f32 %v1112_v38, %v2652_v63  ;;  %2046 = vrcp.f32 %v1289_v36 }
 0x2f1   :  { %2048 = vpow2.f32 %v1634_v6  ;;  %v1635_v7 = vmul.f32 -1.442695, %v1113_v49 }
 0x2f3   :  { %v2041_v44 = vpop.eup %2040  ;;  %2050 = vpow2.f32 %v1635_v7  ;;  %v2669_v45 = vpop.f32.mrb[40].mxu0 }
 0x2f4   :  { %v1290_v47 = vadd.f32 1.0, %v2041_v44  ;;  %v1118_v37 = vpop.f32.mrb[41].mxu0  ;;  %v1117_v2 = vadd.f32 %v2669_v45, %v2667_v11 }
 0x2f5   :  { %v2043_v21 = vpop.eup %2042  ;;  %v1119_v56 = vadd.f32 %v1118_v37, %v2652_v63  ;;  %v2672_v51 = vpop.f32.mrb[42].mxu0 }
 0x2f6   :  { %2052 = vrcp.f32 %v1290_v47  ;;  %v1291_v27 = vadd.f32 1.0, %v2043_v21  ;;  %v1122_v50 = vpop.f32.mrb[43].mxu0 }
 0x2f7   :  { %v1636_v40 = vmul.f32 -1.442695, %v1119_v56  ;;  %v1123_v48 = vadd.f32 %v1122_v50, %v2652_v63  ;;  %v2045_v8 = vpop.eup %2044 }
 0x2f8   :  { %2054 = vrcp.f32 %v1291_v27  ;;  %v1363_v15 = vmul.f32 %v2045_v8, %v1087_v54 }
 0x2f9   :  { %2056 = vpow2.f32 %v1636_v40  ;;  %v1637_v1 = vmul.f32 -1.442695, %v1123_v48  ;;  %v2047_v35 = vpop.eup %2046  ;;  %v1121_v48 = vadd.f32 %v2672_v51, %v2667_v11 }
 0x2fa   :  { %v1364_v25 = vmul.f32 %v2047_v35, %v1091_v32 }
 0x2fb   :  { %v2049_v41 = vpop.eup %2048  ;;  %2058 = vpow2.f32 %v1637_v1  ;;  %v2677_v43 = vpop.f32.mrb[44].mxu0 }
 0x2fc   :  { %v1292_v39 = vadd.f32 1.0, %v2049_v41  ;;  %v1128_v62 = vpop.f32.mrb[45].mxu0  ;;  %v1708_v31 = vpack.c.bf16 %v1364_v25, %v1363_v15  ;;  %v1127_v51 = vadd.f32 %v2677_v43, %v2667_v11 }
 0x2fd   :  { %v2051_v33 = vpop.eup %2050  ;;  %v1129_v46 = vadd.f32 %v1128_v62, %v2652_v63  ;;  %v2680_v12 = vpop.f32.mrb[46].mxu0 }
 0x2fe   :  { %2060 = vrcp.f32 %v1292_v39  ;;  %v1293_v61 = vadd.f32 1.0, %v2051_v33  ;;  %v1132_v18 = vpop.f32.mrb[47].mxu0  ;;  %1709 = vst [vmem:[#allocation5] sm:$0xff] %v1708_v31  }
 0x2ff   :  { %v1638_v5 = vmul.f32 -1.442695, %v1129_v46  ;;  %v1133_v57 = vadd.f32 %v1132_v18, %v2652_v63 }
 0x300   :  { %v2053_v58 = vpop.eup %2052  ;;  %2062 = vrcp.f32 %v1293_v61 }
 0x301   :  { %v1365_v19 = vmul.f32 %v2053_v58, %v1097_v3  ;;  %2064 = vpow2.f32 %v1638_v5  ;;  %v1639_v4 = vmul.f32 -1.442695, %v1133_v57  ;;  %v1131_v57 = vadd.f32 %v2680_v12, %v2667_v11 }
 0x302   :  { %v2055_v9 = vpop.eup %2054 }
 0x303   :  { %v2057_v20 = vpop.eup %2056  ;;  %v1366_v42 = vmul.f32 %v2055_v9, %v1101_v55  ;;  %2066 = vpow2.f32 %v1639_v4 }
 0x304   :  { %v2686_v30 = vpop.f32.mrb[48].mxu0  ;;  %v1294_v10 = vadd.f32 1.0, %v2057_v20 }
 0x305   :  { %v1138_v53 = vpop.f32.mrb[49].mxu0  ;;  %v2059_v0 = vpop.eup %2058  ;;  %v1713_v13 = vpack.c.bf16 %v1366_v42, %v1365_v19  ;;  %v1137_v12 = vadd.f32 %v2686_v30, %v2667_v11 }
 0x306   :  { %v1139_v14 = vadd.f32 %v1138_v53, %v2652_v63  ;;  %v2689_v16 = vpop.f32.mrb[50].mxu0  ;;  %2068 = vrcp.f32 %v1294_v10  ;;  %v1295_v59 = vadd.f32 1.0, %v2059_v0 }
 0x307   :  { %v1142_v17 = vpop.f32.mrb[51].mxu0  ;;  %1765 = vst [vmem:[#allocation5 + $0x8] sm:$0xff] %v1713_v13  }
 0x308   :  { %v1640_v23 = vmul.f32 -1.442695, %v1139_v14  ;;  %v1143_v26 = vadd.f32 %v1142_v17, %v2652_v63  ;;  %v2061_v28 = vpop.eup %2060  ;;  %2070 = vrcp.f32 %v1295_v59 }
 0x309   :  { %v1367_v29 = vmul.f32 %v2061_v28, %v1107_v24 }
 0x30a   :  { %2072 = vpow2.f32 %v1640_v23  ;;  %v1641_v34 = vmul.f32 -1.442695, %v1143_v26  ;;  %v2063_v22 = vpop.eup %2062  ;;  %v1141_v26 = vadd.f32 %v2689_v16, %v2667_v11 }
 0x30b   :  { %v2065_v36 = vpop.eup %2064  ;;  %v1368_v38 = vmul.f32 %v2063_v22, %v1111_v60 }
 0x30c   :  { %2074 = vpow2.f32 %v1641_v34  ;;  %v2696_v6 = vpop.f32.mrb[52].mxu0  ;;  %v1296_v49 = vadd.f32 1.0, %v2065_v36 }
 0x30d   :  { %v1148_v7 = vpop.f32.mrb[53].mxu0  ;;  %v2067_v52 = vpop.eup %2066  ;;  %v1718_v44 = vpack.c.bf16 %v1368_v38, %v1367_v29  ;;  %v1147_v16 = vadd.f32 %v2696_v6, %v2667_v11 }
 0x30e   :  { %v1149_v47 = vadd.f32 %v1148_v7, %v2652_v63  ;;  %v2699_v37 = vpop.f32.mrb[54].mxu0  ;;  %2076 = vrcp.f32 %v1296_v49  ;;  %v1297_v21 = vadd.f32 1.0, %v2067_v52 }
 0x30f   :  { %v1152_v56 = vpop.f32.mrb[55].mxu0  ;;  %1766 = vst [vmem:[#allocation5 + $0x10] sm:$0xff] %v1718_v44  }
 0x310   :  { %v1642_v27 = vmul.f32 -1.442695, %v1149_v47  ;;  %v1153_v50 = vadd.f32 %v1152_v56, %v2652_v63  ;;  %v2069_v54 = vpop.eup %2068  ;;  %2078 = vrcp.f32 %v1297_v21 }
 0x311   :  { %v1369_v40 = vmul.f32 %v2069_v54, %v1117_v2 }
 0x312   :  { %2080 = vpow2.f32 %v1642_v27  ;;  %v1643_v8 = vmul.f32 -1.442695, %v1153_v50  ;;  %v2071_v15 = vpop.eup %2070  ;;  %v1151_v50 = vadd.f32 %v2699_v37, %v2667_v11 }
 0x313   :  { %v1370_v1 = vmul.f32 %v2071_v15, %v1121_v48 }
 0x314   :  { %v2073_v32 = vpop.eup %2072  ;;  %2082 = vpow2.f32 %v1643_v8  ;;  %v2706_v35 = vpop.f32.mrb[56].mxu0 }
 0x315   :  { %v1298_v41 = vadd.f32 1.0, %v2073_v32  ;;  %v1158_v25 = vpop.f32.mrb[57].mxu0  ;;  %v1723_v39 = vpack.c.bf16 %v1370_v1, %v1369_v40  ;;  %v1157_v37 = vadd.f32 %v2706_v35, %v2667_v11 }
 0x316   :  { %v2075_v45 = vpop.eup %2074  ;;  %v1159_v62 = vadd.f32 %v1158_v25, %v2652_v63  ;;  %v2709_v33 = vpop.f32.mrb[58].mxu0 }
 0x317   :  { %2084 = vrcp.f32 %v1298_v41  ;;  %v1299_v31 = vadd.f32 1.0, %v2075_v45  ;;  %v1162_v46 = vpop.f32.mrb[59].mxu0  ;;  %1767 = vst [vmem:[#allocation5 + $0x18] sm:$0xff] %v1723_v39  }
 0x318   :  { %v1644_v61 = vmul.f32 -1.442695, %v1159_v62  ;;  %v1163_v18 = vadd.f32 %v1162_v46, %v2652_v63  ;;  %v2077_v3 = vpop.eup %2076 }
 0x319   :  { %2086 = vrcp.f32 %v1299_v31  ;;  %v1371_v5 = vmul.f32 %v2077_v3, %v1127_v51 }
 0x31a   :  { %2088 = vpow2.f32 %v1644_v61  ;;  %v1645_v58 = vmul.f32 -1.442695, %v1163_v18  ;;  %v2079_v19 = vpop.eup %2078  ;;  %v1161_v18 = vadd.f32 %v2709_v33, %v2667_v11 }
 0x31b   :  { %v1372_v4 = vmul.f32 %v2079_v19, %v1131_v57 }
 0x31c   :  { %v2081_v55 = vpop.eup %2080  ;;  %2090 = vpow2.f32 %v1645_v58  ;;  %v2716_v9 = vpop.f32.mrb[60].mxu0 }
 0x31d   :  { %v1300_v20 = vadd.f32 1.0, %v2081_v55  ;;  %v1168_v42 = vpop.f32.mrb[61].mxu0  ;;  %v1728_v10 = vpack.c.bf16 %v1372_v4, %v1371_v5  ;;  %v1167_v33 = vadd.f32 %v2716_v9, %v2667_v11 }
 0x31e   :  { %v2083_v43 = vpop.eup %2082  ;;  %v1169_v53 = vadd.f32 %v1168_v42, %v2652_v63  ;;  %v2719_v0 = vpop.f32.mrb[62].mxu0 }
 0x31f   :  { %2092 = vrcp.f32 %v1300_v20  ;;  %v1301_v13 = vadd.f32 1.0, %v2083_v43  ;;  %v1172_v14 = vpop.f32.mrb[63].mxu0  ;;  %1768 = vst [vmem:[#allocation5 + $0x20] sm:$0xff] %v1728_v10  }
 0x320   :  { %v1646_v59 = vmul.f32 -1.442695, %v1169_v53  ;;  %v1173_v17 = vadd.f32 %v1172_v14, %v2652_v63 }
 0x321   :  { %v2085_v24 = vpop.eup %2084  ;;  %2094 = vrcp.f32 %v1301_v13 }
 0x322   :  { %v1373_v23 = vmul.f32 %v2085_v24, %v1137_v12  ;;  %2096 = vpow2.f32 %v1646_v59  ;;  %v1647_v28 = vmul.f32 -1.442695, %v1173_v17  ;;  %v1171_v17 = vadd.f32 %v2719_v0, %v2667_v11 }
 0x323   :  { %v2087_v29 = vpop.eup %2086 }
 0x324   :  { %v2089_v60 = vpop.eup %2088  ;;  %v1374_v34 = vmul.f32 %v2087_v29, %v1141_v26  ;;  %2098 = vpow2.f32 %v1647_v28  ;;  %v2726_v22 = vpop.f32.mrb[64].mxu0 }
 0x325   :  { %v1302_v36 = vadd.f32 1.0, %v2089_v60  ;;  %v1178_v38 = vpop.f32.mrb[65].mxu0  ;;  %v1177_v0 = vadd.f32 %v2726_v22, %v2667_v11 }
 0x326   :  { %v2091_v30 = vpop.eup %2090  ;;  %v1733_v49 = vpack.c.bf16 %v1374_v34, %v1373_v23  ;;  %v1179_v7 = vadd.f32 %v1178_v38, %v2652_v63  ;;  %v2729_v52 = vpop.f32.mrb[66].mxu0 }
 0x327   :  { %2100 = vrcp.f32 %v1302_v36  ;;  %v1303_v44 = vadd.f32 1.0, %v2091_v30  ;;  %v1182_v47 = vpop.f32.mrb[67].mxu0 }
 0x328   :  { %1769 = vst [vmem:[#allocation5 + $0x28] sm:$0xff] %v1733_v49   ;;  %v1648_v21 = vmul.f32 -1.442695, %v1179_v7  ;;  %v1183_v56 = vadd.f32 %v1182_v47, %v2652_v63 }
 0x329   :  { %v2093_v2 = vpop.eup %2092  ;;  %2102 = vrcp.f32 %v1303_v44 }
 0x32a   :  { %v1375_v27 = vmul.f32 %v2093_v2, %v1147_v16  ;;  %2104 = vpow2.f32 %v1648_v21  ;;  %v1649_v54 = vmul.f32 -1.442695, %v1183_v56  ;;  %v1181_v21 = vadd.f32 %v2729_v52, %v2667_v11 }
 0x32b   :  { %v2095_v40 = vpop.eup %2094 }
 0x32c   :  { %v2097_v48 = vpop.eup %2096  ;;  %v1376_v8 = vmul.f32 %v2095_v40, %v1151_v50  ;;  %2106 = vpow2.f32 %v1649_v54  ;;  %v2736_v15 = vpop.f32.mrb[68].mxu0 }
 0x32d   :  { %v1304_v32 = vadd.f32 1.0, %v2097_v48  ;;  %v1188_v1 = vpop.f32.mrb[69].mxu0  ;;  %v1187_v22 = vadd.f32 %v2736_v15, %v2667_v11 }
 0x32e   :  { %v2099_v6 = vpop.eup %2098  ;;  %v1738_v41 = vpack.c.bf16 %v1376_v8, %v1375_v27  ;;  %v1189_v25 = vadd.f32 %v1188_v1, %v2652_v63  ;;  %v2739_v45 = vpop.f32.mrb[70].mxu0 }
 0x32f   :  { %2108 = vrcp.f32 %v1304_v32  ;;  %v1305_v39 = vadd.f32 1.0, %v2099_v6  ;;  %v1192_v62 = vpop.f32.mrb[71].mxu0  ;;  %v1191_v32 = vadd.f32 %v2739_v45, %v2667_v11 }
 0x330   :  { %1770 = vst [vmem:[#allocation5 + $0x30] sm:$0xff] %v1738_v41   ;;  %v1650_v31 = vmul.f32 -1.442695, %v1189_v25  ;;  %v1193_v46 = vadd.f32 %v1192_v62, %v2652_v63 }
 0x331   :  { %v2101_v51 = vpop.eup %2100  ;;  %2110 = vrcp.f32 %v1305_v39 }
 0x332   :  { %v1377_v61 = vmul.f32 %v2101_v51, %v1157_v37  ;;  %2112 = vpow2.f32 %v1650_v31  ;;  %v1651_v3 = vmul.f32 -1.442695, %v1193_v46 }
 0x333   :  { %v2103_v5 = vpop.eup %2102 }
 0x334   :  { %v2105_v57 = vpop.eup %2104  ;;  %v1378_v58 = vmul.f32 %v2103_v5, %v1161_v18  ;;  %2114 = vpow2.f32 %v1651_v3  ;;  %v2746_v19 = vpop.f32.mrb[72].mxu0 }
 0x335   :  { %v1306_v55 = vadd.f32 1.0, %v2105_v57  ;;  %v1198_v4 = vpop.f32.mrb[73].mxu0  ;;  %v1197_v39 = vadd.f32 %v2746_v19, %v2667_v11 }
 0x336   :  { %v2107_v35 = vpop.eup %2106  ;;  %v1743_v20 = vpack.c.bf16 %v1378_v58, %v1377_v61  ;;  %v1199_v42 = vadd.f32 %v1198_v4, %v2652_v63  ;;  %v1200_v43 = vpop.f32.mrb[74].mxu0 }
 0x337   :  { %2116 = vrcp.f32 %v1306_v55  ;;  %v1307_v10 = vadd.f32 1.0, %v2107_v35  ;;  %v1202_v53 = vpop.f32.mrb[75].mxu0  ;;  %v1201_v15 = vadd.f32 %v1200_v43, %v2667_v11 }
 0x338   :  { %1771 = vst [vmem:[#allocation5 + $0x38] sm:$0xff] %v1743_v20   ;;  %v1652_v13 = vmul.f32 -1.442695, %v1199_v42  ;;  %v1203_v14 = vadd.f32 %v1202_v53, %v2652_v63 }
 0x339   :  { %v2109_v12 = vpop.eup %2108  ;;  %2118 = vrcp.f32 %v1307_v10 }
 0x33a   :  { %v1379_v59 = vmul.f32 %v2109_v12, %v1167_v33  ;;  %2120 = vpow2.f32 %v1652_v13  ;;  %v1653_v24 = vmul.f32 -1.442695, %v1203_v14 }
 0x33b   :  { %v2111_v23 = vpop.eup %2110 }
 0x33c   :  { %v2113_v26 = vpop.eup %2112  ;;  %v1380_v28 = vmul.f32 %v2111_v23, %v1171_v17  ;;  %2122 = vpow2.f32 %v1653_v24  ;;  %v1206_v29 = vpop.f32.mrb[76].mxu0 }
 0x33d   :  { %v1308_v60 = vadd.f32 1.0, %v2113_v26  ;;  %v1208_v34 = vpop.f32.mrb[77].mxu0  ;;  %v1207_v45 = vadd.f32 %v1206_v29, %v2667_v11 }
 0x33e   :  { %v2115_v36 = vpop.eup %2114  ;;  %v1748_v9 = vpack.c.bf16 %v1380_v28, %v1379_v59  ;;  %v1209_v38 = vadd.f32 %v1208_v34, %v2652_v63  ;;  %v1210_v30 = vpop.f32.mrb[78].mxu0 }
 0x33f   :  { %2124 = vrcp.f32 %v1308_v60  ;;  %v1309_v49 = vadd.f32 1.0, %v2115_v36  ;;  %v1211_v7 = vpop.f32.mrb[79].mxu0 }
 0x340   :  { %1772 = vst [vmem:[#allocation5 + $0x40] sm:$0xff] %v1748_v9   ;;  %v1654_v44 = vmul.f32 -1.442695, %v1209_v38 }
 0x341   :  { %v2117_v47 = vpop.eup %2116  ;;  %2126 = vrcp.f32 %v1309_v49 }
 0x342   :  { %v1381_v16 = vmul.f32 %v2117_v47, %v1177_v0  ;;  %2128 = vpow2.f32 %v1654_v44 }
 0x343   :  { %v2119_v56 = vpop.eup %2118 }
 0x344   :  { %v2121_v2 = vpop.eup %2120  ;;  %v1382_v27 = vmul.f32 %v2119_v56, %v1181_v21 }
 0x345   :  { %v1310_v63 = vadd.f32 1.0, %v2121_v2 }
 0x346   :  { %v2123_v50 = vpop.eup %2122  ;;  %v1753_v54 = vpack.c.bf16 %v1382_v27, %v1381_v16 }
 0x347   :  { %2130 = vrcp.f32 %v1310_v63  ;;  %v1311_v40 = vadd.f32 1.0, %v2123_v50 }
 0x348   :  { %1773 = vst [vmem:[#allocation5 + $0x48] sm:$0xff] %v1753_v54  }
 0x349   :  { %v2125_v48 = vpop.eup %2124  ;;  %2132 = vrcp.f32 %v1311_v40 }
 0x34a   :  { %v1383_v8 = vmul.f32 %v2125_v48, %v1187_v22 }
 0x34b   :  { %v2127_v52 = vpop.eup %2126 }
 0x34c   :  { %v2129_v1 = vpop.eup %2128  ;;  %v1384_v6 = vmul.f32 %v2127_v52, %v1191_v32 }
 0x34d   :  { %v1312_v41 = vadd.f32 1.0, %v2129_v1 }
 0x34e   :  { %v1758_v25 = vpack.c.bf16 %v1384_v6, %v1383_v8 }
 0x34f   :  { %2134 = vrcp.f32 %v1312_v41 }
 0x350   :  { %1774 = vst [vmem:[#allocation5 + $0x50] sm:$0xff] %v1758_v25  }
 0x351   :  { %v2131_v62 = vpop.eup %2130 }
 0x352   :  { %v1385_v37 = vmul.f32 %v2131_v62, %v1197_v39 }
 0x353   :  { %v2133_v31 = vpop.eup %2132 }
 0x354   :  { %v1386_v46 = vmul.f32 %v2133_v31, %v1201_v15 }
 0x356   :  { %v1763_v51 = vpack.c.bf16 %v1386_v46, %v1385_v37 }
 0x358   :  { %1775 = vst [vmem:[#allocation5 + $0x58] sm:$0xff] %v1763_v51  }
 0x359   :  { %v2135_v61 = vpop.eup %2134 }
 0x35a   :  { %v1387_v18 = vmul.f32 %v2135_v61, %v1207_v45 }
 0x35c   :  { %v1704_v3 = vpack.c.bf16 %v1387_v18, %v1387_v18 }
 0x35e   :  { %1513 = vst [vmem:[#allocation5 + $0x60] sm:$0xf] %v1704_v3 }
 0x35f   :  { %2169 = shalt.err (!%p2166_p12)
}
 0x360   :  { %s2170_s9 = scalar_lea.hbm %s2783_s4, 1600 }
 0x361   :  { %p2171_p13 = scmp.ne.s32.totalorder %s2783_s4, %s2170_s9  ;;  %p2174_p0 = scmp.lt.u32.totalorder %s2170_s9, %s2783_s4 }
 0x363   :  { %p2176_p1 = pnand %p2174_p0, %p2171_p13 }
 0x365   :  { %2179 = shalt.err (!%p2176_p1)
}
 0x366   :  { %s2189_s13 = smov 64   ;;  %s2190_s14 = smov 4  }
 0x367   :  { %1525 = dma.vmem_to_hbm [thread:$0]  %s1520_s6, 1600, %s2783_s4, [#allocation4], %s2189_s13, %s2189_s13, %s2190_s14  }
 0x368   :  { %2182 = dma.done.wait [#allocation4], 1600  }
 0x369   :  { %2183 = vsyncadd [#allocation4], 4294965696 }
 0x36a   :  { %1529 = vsyncpa [#allocation3], 1 }
 0x36b   :  { %1530 = vsyncpa [#allocation4], 1 }

</bundles_post_ra>
